<compile_context>
chip_gen: v5e
topology: v5e:2x2
jax: 0.10.0
libtpu: 0.0.40
codegen_flags: <defaults>
</compile_context>

<pallas_src>
import functools

import jax
import jax.numpy as jnp
from jax.experimental import pallas as pl
from jax.experimental.pallas import tpu as pltpu


def _round_up(x, m):
    return ((x + m - 1) // m) * m


def _vmem_cap_bytes():
    # Physical VMEM differs per generation (128 MiB v5e/v6e, 64 MiB per-TC on v7x):
    # query it and keep headroom instead of a hard-coded 100 MiB cap.
    try:
        cap = int(pltpu.get_tpu_info().vmem_capacity_bytes)
    except Exception:  # conservative fallback, safe on every generation
        cap = 64 * 1024 * 1024
    return (cap * 3) // 4


# ----------------------------------------------------------------------------------
# Kernel 1: dot-attention (online softmax over S tiles) + fused concat Linear + GRU
# ----------------------------------------------------------------------------------
def _attn_gru_kernel(S, TS, H_pad,
                     emb_ref, hid_ref, enc_ref,
                     wcat_ref, bc_ref,
                     wih_ref, bih_ref, whh_ref, bhh_ref,
                     hnew_ref, attw_ref,
                     m_sc, l_sc, ctx_sc, score_sc):
    s = pl.program_id(0)
    n_s = pl.num_programs(0)

    @pl.when(s == 0)
    def _init():
        m_sc[...] = jnp.full_like(m_sc, -1e30)
        l_sc[...] = jnp.zeros_like(l_sc)
        ctx_sc[...] = jnp.zeros_like(ctx_sc)

    hid = hid_ref[...]                                    # (B, H_pad)
    enc = enc_ref[...]                                    # (B, TS, H_pad)
    B = hid.shape[0]

    # dot scores for this S tile on the VPU/XLU (q=1 decode regime: MXU passes with
    # M=1 just add latency/drain and serialize with the GRU matmuls).
    raw = jnp.sum(hid[:, None, :] * enc, axis=-1)         # (B, TS)
    col = jax.lax.broadcasted_iota(jnp.int32, (B, TS), 1) + s * TS
    scores = jnp.where(col < S, raw, -1e30)               # mask padded S positions

    # stash masked raw scores in a lane-dense VMEM slab; normalized in the epilogue.
    off = pl.multiple_of(s * TS, TS)
    score_sc[:, pl.ds(off, TS)] = scores

    # online softmax accumulation of the context vector
    m_prev = m_sc[...]
    m_new = jnp.maximum(m_prev, jnp.max(scores, axis=-1, keepdims=True))
    alpha = jnp.exp(m_prev - m_new)
    e = jnp.exp(scores - m_new)                           # (B, TS)
    l_sc[...] = alpha * l_sc[...] + jnp.sum(e, axis=-1, keepdims=True)
    ctx_sc[...] = alpha * ctx_sc[...] + jnp.sum(e[:, :, None] * enc, axis=1)
    m_sc[...] = m_new

    @pl.when(s == n_s - 1)
    def _finalize():
        inv_l = 1.0 / l_sc[...]                           # exact: attn weights sum to 1
        attw_ref[...] = jnp.exp(score_sc[...] - m_sc[...]) * inv_l    # (B, S_pad)
        context = ctx_sc[...] * inv_l                     # (B, H_pad)

        # concat Linear as ONE fused (B, 2H) @ (2H, H) matmul
        cat = jnp.concatenate([emb_ref[...], context], axis=-1)       # (B, 2*H_pad)
        x = (jnp.dot(cat, wcat_ref[...], preferred_element_type=jnp.float32)
             + bc_ref[...])                               # (B, H_pad)

        # GRU cell: two fused matmuls, gates sliced at 128-aligned offsets (r|z|n)
        gi = jnp.dot(x, wih_ref[...], preferred_element_type=jnp.float32) + bih_ref[...]
        gh = jnp.dot(hid, whh_ref[...], preferred_element_type=jnp.float32) + bhh_ref[...]
        r = jax.nn.sigmoid(gi[:, :H_pad] + gh[:, :H_pad])
        z = jax.nn.sigmoid(gi[:, H_pad:2 * H_pad] + gh[:, H_pad:2 * H_pad])
        n = jnp.tanh(gi[:, 2 * H_pad:] + r * gh[:, 2 * H_pad:])
        hnew_ref[...] = (1.0 - z) * n + z * hid


# ----------------------------------------------------------------------------------
# Kernel 2: output projection, tiled over V (optional NaN/logit-faithful path)
# ----------------------------------------------------------------------------------
def _out_proj_kernel(h_ref, w_ref, b_ref, logit_ref):
    logit_ref[...] = (jnp.dot(h_ref[...], w_ref[...],
                              preferred_element_type=jnp.float32) + b_ref[...])


def _out_projection(h_pad, wout, bout, *, tile_v=512):
    """h_pad (B,H_pad) f32, wout (H_pad,V_pad) bf16 (pre-cast once), bout (1,V_pad) f32."""
    B, H_pad = h_pad.shape
    V_pad = wout.shape[1]

    # Largest 128-multiple tile that divides V_pad; keep >=2 tiles when possible so
    # the "parallel" V axis can feed both v7x TensorCores.
    tile_v = min(tile_v, V_pad)
    if V_pad // tile_v < 2 and V_pad >= 256:
        tile_v = V_pad // 2
    tile_v = max(128, (tile_v // 128) * 128)
    while V_pad % tile_v:
        tile_v -= 128

    h = h_pad.astype(wout.dtype)                          # tiny (B,H_pad) cast only

    blocked = (B * H_pad * h.dtype.itemsize
               + H_pad * tile_v * wout.dtype.itemsize     # weight tile (streamed)
               + tile_v * 4                               # bias tile
               + B * tile_v * 4)                          # output tile
    vmem = int(min(_vmem_cap_bytes(), 2 * blocked + (4 << 20)))

    cost = pl.CostEstimate(
        flops=2 * B * H_pad * V_pad,
        transcendentals=0,
        bytes_accessed=int(h.size * h.dtype.itemsize + wout.size * wout.dtype.itemsize
                           + bout.size * 4 + B * V_pad * 4))

    # NOTE: if the weight stream still shows exposed DMA, the weight BlockSpec can be
    # deepened with pipeline_mode=pl.Buffered(3) (watch VMEM on v7x).  int8 (v5e/v6e)
    # or fp8 (v7x) weights would halve HBM bytes further on this memory-bound kernel.
    return pl.pallas_call(
        _out_proj_kernel,
        out_shape=jax.ShapeDtypeStruct((B, V_pad), jnp.float32),
        grid_spec=pltpu.PrefetchScalarGridSpec(
            num_scalar_prefetch=0,
            grid=(V_pad // tile_v,),
            in_specs=[
                pl.BlockSpec((B, H_pad), lambda j: (0, 0)),
                pl.BlockSpec((H_pad, tile_v), lambda j: (0, j)),
                pl.BlockSpec((1, tile_v), lambda j: (0, j)),
            ],
            out_specs=pl.BlockSpec((B, tile_v), lambda j: (0, j))),
        compiler_params=pltpu.CompilerParams(
            dimension_semantics=("parallel",),            # megacore-shard V on v7x
            vmem_limit_bytes=vmem),
        cost_estimate=cost,
    )(h, wout, bout)


# ----------------------------------------------------------------------------------
# Parameter preparation: pad lane dims to 128 and pre-cast projection weights ONCE
# ----------------------------------------------------------------------------------
def prepare_params(params, *, out_weight_dtype=jnp.bfloat16):
    H = params["bc"].shape[0]
    V = params["bout"].shape[0]
    H_pad = _round_up(H, 128)
    V_pad = _round_up(V, 128)

    def pad2(w, r, c):
        return jnp.pad(w, ((0, r - w.shape[0]), (0, c - w.shape[1])))

    # concat Linear: split into [embedded | context] halves, pad each, re-stack rows
    wce, wcc = params["wc_t"][:H], params["wc_t"][H:]
    wcat = jnp.concatenate([pad2(wce, H_pad, H_pad), pad2(wcc, H_pad, H_pad)], axis=0)

    def pad_gate_w(w_t):                                  # (H,3H) -> (H_pad,3*H_pad) r|z|n
        gates = jnp.split(w_t, 3, axis=1)
        return jnp.concatenate([pad2(g, H_pad, H_pad) for g in gates], axis=1)

    def pad_gate_b(b):
        gates = jnp.split(b, 3)
        return jnp.concatenate(
            [jnp.pad(g, (0, H_pad - H)) for g in gates]).reshape(1, 3 * H_pad)

    return {
        "H": H, "V": V, "H_pad": H_pad, "V_pad": V_pad,
        "emb_table": jnp.pad(params["emb_table"], ((0, 0), (0, H_pad - H))),
        "wcat": wcat,
        "bc": jnp.pad(params["bc"], (0, H_pad - H)).reshape(1, H_pad),
        "wih": pad_gate_w(params["wih_t"]), "bih": pad_gate_b(params["bih"]),
        "whh": pad_gate_w(params["whh_t"]), "bhh": pad_gate_b(params["bhh"]),
        # pre-pad + pre-cast the (H,V) projection weight once (NOT per decode step)
        "wout": pad2(params["wout_t"], H_pad, V_pad).astype(out_weight_dtype),
        "bout": jnp.pad(params["bout"], (0, V_pad - V)).reshape(1, V_pad)
                    .astype(jnp.float32),
    }


# ----------------------------------------------------------------------------------
# Forward wrapper
# ----------------------------------------------------------------------------------
def attn_decoder_forward(y, hidden, encoder_output, prepared, *,
                         compute_out_projection=False, tile_v=512, tile_s=512):
    """y: (B,1) int32, hidden: (1,B,H) f32, encoder_output: (B,S,H) f32."""
    H, V = prepared["H"], prepared["V"]
    H_pad, V_pad = prepared["H_pad"], prepared["V_pad"]
    B, S, _ = encoder_output.shape

    TS = min(_round_up(tile_s, 128), _round_up(S, 128))   # S tile (lane-dense)
    S_pad = _round_up(S, TS)

    # glue kept in plain XLA: embedding gather + tiny activation padding
    embedded = prepared["emb_table"][y[:, 0]]                       # (B, H_pad)
    h0 = jnp.pad(hidden[0], ((0, 0), (0, H_pad - H)))               # (B, H_pad)
    enc = jnp.pad(encoder_output,
                  ((0, 0), (0, S_pad - S), (0, H_pad - H)))         # (B, S_pad, H_pad)

    const2 = lambda s: (0, 0)
    kernel = functools.partial(_attn_gru_kernel, S, TS, H_pad)

    blocked = (2 * B * H_pad + B * TS * H_pad
               + 2 * H_pad * H_pad + H_pad
               + 2 * H_pad * 3 * H_pad + 2 * 3 * H_pad
               + B * H_pad + B * S_pad) * 4
    scratch = (2 * B + B * H_pad + B * S_pad) * 4
    vmem1 = int(min(_vmem_cap_bytes(), 2 * blocked + scratch + (4 << 20)))

    cost1 = pl.CostEstimate(
        flops=int(4 * B * S_pad * H_pad                   # scores + context
                  + 2 * B * (2 * H_pad) * H_pad           # fused concat Linear
                  + 4 * B * H_pad * 3 * H_pad),           # fused GRU matmuls
        transcendentals=int(2 * B * S_pad + 3 * B * H_pad),
        bytes_accessed=int(4 * (2 * B * H_pad + B * S_pad * H_pad
                                + 2 * H_pad * H_pad + 6 * H_pad * H_pad
                                + 7 * H_pad + B * H_pad + B * S_pad)))

    h_new_pad, attw_pad = pl.pallas_call(
        kernel,
        out_shape=(jax.ShapeDtypeStruct((B, H_pad), jnp.float32),
                   jax.ShapeDtypeStruct((B, S_pad), jnp.float32)),
        grid_spec=pltpu.PrefetchScalarGridSpec(
            num_scalar_prefetch=0,
            grid=(S_pad // TS,),
            in_specs=[
                pl.BlockSpec((B, H_pad), const2),                     # embedded
                pl.BlockSpec((B, H_pad), const2),                     # hidden
                pl.BlockSpec((B, TS, H_pad), lambda s: (0, s, 0)),    # enc (pipelined)
                pl.BlockSpec((2 * H_pad, H_pad), const2),             # fused concat W
                pl.BlockSpec((1, H_pad), const2),                     # concat bias
                pl.BlockSpec((H_pad, 3 * H_pad), const2),             # GRU W_ih^T
                pl.BlockSpec((1, 3 * H_pad), const2),
                pl.BlockSpec((H_pad, 3 * H_pad), const2),             # GRU W_hh^T
                pl.BlockSpec((1, 3 * H_pad), const2),
            ],
            out_specs=(pl.BlockSpec((B, H_pad), const2),
                       pl.BlockSpec((B, S_pad), const2)),
            scratch_shapes=[pltpu.VMEM((B, 1), jnp.float32),          # running max
                            pltpu.VMEM((B, 1), jnp.float32),          # running sum
                            pltpu.VMEM((B, H_pad), jnp.float32),      # context acc
                            pltpu.VMEM((B, S_pad), jnp.float32)]),    # raw scores
        compiler_params=pltpu.CompilerParams(
            dimension_semantics=("arbitrary",),           # S axis is a reduction
            vmem_limit_bytes=vmem1),
        cost_estimate=cost1,
    )(embedded, h0, enc,
      prepared["wcat"], prepared["bc"],
      prepared["wih"], prepared["bih"], prepared["whh"], prepared["bhh"])

    attn_weights = attw_pad[:, :S].reshape(B, 1, S)
    hidden_new = h_new_pad[:, :H][None]                               # (1, B, H)

    if compute_out_projection:
        # NaN/Inf-faithful path: compute real logits (V-tiled, bf16 weights), then the
        # module's F.softmax over the length-1 sequence dim.
        logits_pad = _out_projection(h_new_pad, prepared["wout"], prepared["bout"],
                                     tile_v=tile_v)
        output = jax.nn.softmax(logits_pad[:, :V][:, None, :], axis=1)  # == 1.0
    else:
        # F.softmax(dim=1) over a singleton dim is identically 1.0 for finite logits:
        # the (HxV) projection is dead compute; skip it (documented divergence only
        # for NaN/Inf logits or callers that need the raw logits).
        output = jnp.ones((B, 1, V), jnp.float32)

    return output, hidden_new, attn_weights


# ----------------------------------------------------------------------------------
# Pure-JAX reference mirroring the PyTorch module (dot attention)
# ----------------------------------------------------------------------------------
def _reference_forward(y, hidden, encoder_output, params):
    H = hidden.shape[-1]
    embedded = params["emb_table"][y[:, 0]][:, None, :]             # (B,1,H)
    h0 = hidden[0][:, None, :]                                      # (B,1,H)
    scores = jnp.sum(h0 * encoder_output, axis=2)                   # (B,S)
    attw = jax.nn.softmax(scores, axis=1)[:, None, :]               # (B,1,S)
    context = jnp.einsum("bos,bsh->boh", attw, encoder_output)      # (B,1,H)
    concat_in = jnp.concatenate([embedded, context], axis=2)        # (B,1,2H)
    x = concat_in @ params["wc_t"] + params["bc"]                   # (B,1,H)
    gi = x[:, 0] @ params["wih_t"] + params["bih"]
    gh = hidden[0] @ params["whh_t"] + params["bhh"]
    i_r, i_z, i_n = gi[:, :H], gi[:, H:2 * H], gi[:, 2 * H:]
    h_r, h_z, h_n = gh[:, :H], gh[:, H:2 * H], gh[:, 2 * H:]
    r = jax.nn.sigmoid(i_r + h_r)
    z = jax.nn.sigmoid(i_z + h_z)
    n = jnp.tanh(i_n + r * h_n)
    h_new = (1.0 - z) * n + z * hidden[0]
    logits = h_new[:, None, :] @ params["wout_t"] + params["bout"]
    out = jax.nn.softmax(logits, axis=1)                            # softmax over seq dim (=1)
    return out, h_new[None], attw


def init_params(key, vocab_size, hidden_size):
    ks = jax.random.split(key, 9)
    H, V = hidden_size, vocab_size
    s = 0.1
    return {
        "emb_table": jax.random.normal(ks[0], (V, H), jnp.float32) * s,
        "wc_t":      jax.random.normal(ks[1], (2 * H, H), jnp.float32) * s,  # concat Linear (in,out)
        "bc":        jax.random.normal(ks[2], (H,), jnp.float32) * s,
        "wih_t":     jax.random.normal(ks[3], (H, 3 * H), jnp.float32) * s,  # GRU weight_ih^T (r,z,n)
        "bih":       jax.random.normal(ks[4], (3 * H,), jnp.float32) * s,
        "whh_t":     jax.random.normal(ks[5], (H, 3 * H), jnp.float32) * s,  # GRU weight_hh^T (r,z,n)
        "bhh":       jax.random.normal(ks[6], (3 * H,), jnp.float32) * s,
        "wout_t":    jax.random.normal(ks[7], (H, V), jnp.float32) * s,      # out Linear (in,out)
        "bout":      jax.random.normal(ks[8], (V,), jnp.float32) * s,
    }


if __name__ == "__main__":
    B, S, H, V = 2, 8, 32, 256
    key = jax.random.PRNGKey(0)
    kp, ky, kh, ke = jax.random.split(key, 4)

    params = init_params(kp, V, H)
    prepared = prepare_params(params)          # pad + pre-cast once (not per step)
    y = jax.random.randint(ky, (B, 1), 0, V, dtype=jnp.int32)
    hidden = jax.random.normal(kh, (1, B, H), jnp.float32)
    encoder_output = jax.random.normal(ke, (B, S, H), jnp.float32)

    ref_out, ref_h, ref_attw = _reference_forward(y, hidden, encoder_output, params)

    # Default (fast) path: dead V-projection removed.
    out, h_new, attw = attn_decoder_forward(y, hidden, encoder_output, prepared)
    jax.block_until_ready((out, h_new, attw))
    assert out.shape == (B, 1, V) and h_new.shape == (1, B, H) and attw.shape == (B, 1, S)
    assert jnp.allclose(out, ref_out, atol=1e-5), "output mismatch"
    assert jnp.allclose(h_new, ref_h, atol=1e-4), "hidden mismatch"
    assert jnp.allclose(attw, ref_attw, atol=1e-4), "attn mismatch"

    # Faithful path: V-tiled, bf16-weight, grid-parallel output projection.
    out2, h_new2, attw2 = attn_decoder_forward(
        y, hidden, encoder_output, prepared, compute_out_projection=True)
    jax.block_until_ready((out2, h_new2, attw2))
    assert jnp.allclose(out2, ref_out, atol=1e-5), "projection-path output mismatch"
    assert jnp.allclose(h_new2, ref_h, atol=1e-4), "projection-path hidden mismatch"

    # Raw-logit fidelity of the bf16 projection against the f32 reference math.
    h_pad = jnp.pad(h_new[0], ((0, 0), (0, prepared["H_pad"] - H)))
    logits_pad = _out_projection(h_pad, prepared["wout"], prepared["bout"])
    ref_logits = h_new[0] @ params["wout_t"] + params["bout"]
    jax.block_until_ready(logits_pad)
    assert jnp.allclose(logits_pad[:, :V], ref_logits, atol=2e-2, rtol=2e-2), \
        "logits mismatch"

    print("KERNEL_OK")
</pallas_src>

<mosaic_0001>
module attributes {stable_mosaic.version = 11 : i64} {
  func.func @_attn_gru_kernel(%arg0: i32, %arg1: memref<2x128xf32, #tpu.memory_space<vmem>>, %arg2: memref<2x128xf32, #tpu.memory_space<vmem>>, %arg3: memref<2x128x128xf32, #tpu.memory_space<vmem>>, %arg4: memref<256x128xf32, #tpu.memory_space<vmem>>, %arg5: memref<1x128xf32, #tpu.memory_space<vmem>>, %arg6: memref<128x384xf32, #tpu.memory_space<vmem>>, %arg7: memref<1x384xf32, #tpu.memory_space<vmem>>, %arg8: memref<128x384xf32, #tpu.memory_space<vmem>>, %arg9: memref<1x384xf32, #tpu.memory_space<vmem>>, %arg10: memref<2x128xf32, #tpu.memory_space<vmem>>, %arg11: memref<2x128xf32, #tpu.memory_space<vmem>>, %arg12: memref<2x1xf32, #tpu.memory_space<vmem>>, %arg13: memref<2x1xf32, #tpu.memory_space<vmem>>, %arg14: memref<2x128xf32, #tpu.memory_space<vmem>>, %arg15: memref<2x128xf32, #tpu.memory_space<vmem>>) attributes {dimension_semantics = [#tpu.dimension_semantics<arbitrary>], iteration_bounds = array<i64: 1>, scalar_prefetch = 0 : i64, scratch_operands = 4 : i64, tpu.core_type = #tpu.core_type<tc>, window_params = [{pipeline_mode = #tpu.pipeline_mode<synchronous>, transform_indices = @transform_0, window_bounds = array<i64: 2, 128>}, {pipeline_mode = #tpu.pipeline_mode<synchronous>, transform_indices = @transform_1, window_bounds = array<i64: 2, 128>}, {transform_indices = @transform_2, window_bounds = array<i64: 2, 128, 128>}, {pipeline_mode = #tpu.pipeline_mode<synchronous>, transform_indices = @transform_3, window_bounds = array<i64: 256, 128>}, {pipeline_mode = #tpu.pipeline_mode<synchronous>, transform_indices = @transform_4, window_bounds = array<i64: 1, 128>}, {pipeline_mode = #tpu.pipeline_mode<synchronous>, transform_indices = @transform_5, window_bounds = array<i64: 128, 384>}, {pipeline_mode = #tpu.pipeline_mode<synchronous>, transform_indices = @transform_6, window_bounds = array<i64: 1, 384>}, {pipeline_mode = #tpu.pipeline_mode<synchronous>, transform_indices = @transform_7, window_bounds = array<i64: 128, 384>}, {pipeline_mode = #tpu.pipeline_mode<synchronous>, transform_indices = @transform_8, window_bounds = array<i64: 1, 384>}, {pipeline_mode = #tpu.pipeline_mode<synchronous>, transform_indices = @transform_9, window_bounds = array<i64: 2, 128>}, {pipeline_mode = #tpu.pipeline_mode<synchronous>, transform_indices = @transform_10, window_bounds = array<i64: 2, 128>}]} {
    %c0_i32 = arith.constant 0 : i32
    %0 = arith.cmpi eq, %arg0, %c0_i32 : i32
    %1 = arith.extui %0 : i1 to i32
    %c0_i32_0 = arith.constant 0 : i32
    %2 = arith.cmpi ne, %1, %c0_i32_0 : i32
    scf.if %2 {
      %cst_25 = arith.constant -1.000000e+30 : f32
      %49 = vector.broadcast %cst_25 : f32 to vector<2x1xf32>
      %c0_26 = arith.constant 0 : index
      %c0_27 = arith.constant 0 : index
      %50 = vector.load %arg12[%c0_26, %c0_27] : memref<2x1xf32, #tpu.memory_space<vmem>>, vector<2x1xf32>
      tpu.vector_store %arg12[%c0_26, %c0_27], %49 {strides = array<i32>} : memref<2x1xf32, #tpu.memory_space<vmem>>, vector<2x1xf32>,
      %cst_28 = arith.constant 0.000000e+00 : f32
      %51 = vector.broadcast %cst_28 : f32 to vector<2x1xf32>
      %c0_29 = arith.constant 0 : index
      %c0_30 = arith.constant 0 : index
      %52 = vector.load %arg13[%c0_29, %c0_30] : memref<2x1xf32, #tpu.memory_space<vmem>>, vector<2x1xf32>
      tpu.vector_store %arg13[%c0_29, %c0_30], %51 {strides = array<i32>} : memref<2x1xf32, #tpu.memory_space<vmem>>, vector<2x1xf32>,
      %cst_31 = arith.constant 0.000000e+00 : f32
      %53 = vector.broadcast %cst_31 : f32 to vector<2x128xf32>
      %c0_32 = arith.constant 0 : index
      %c0_33 = arith.constant 0 : index
      %54 = vector.load %arg14[%c0_32, %c0_33] : memref<2x128xf32, #tpu.memory_space<vmem>>, vector<2x128xf32>
      tpu.vector_store %arg14[%c0_32, %c0_33], %53 {strides = array<i32>} : memref<2x128xf32, #tpu.memory_space<vmem>>, vector<2x128xf32>,
    } else {
    }
    %c0 = arith.constant 0 : index
    %c0_1 = arith.constant 0 : index
    %3 = vector.load %arg2[%c0, %c0_1] : memref<2x128xf32, #tpu.memory_space<vmem>>, vector<2x128xf32>
    %c0_2 = arith.constant 0 : index
    %c0_3 = arith.constant 0 : index
    %c0_4 = arith.constant 0 : index
    %4 = vector.load %arg3[%c0_2, %c0_3, %c0_4] : memref<2x128x128xf32, #tpu.memory_space<vmem>>, vector<2x128x128xf32>
    %5 = vector.shape_cast %3 : vector<2x128xf32> to vector<2x1x128xf32>
    %6 = vector.broadcast %5 : vector<2x1x128xf32> to vector<2x128x128xf32>
    %7 = arith.mulf %6, %4 : vector<2x128x128xf32>
    %cst = arith.constant dense<0.000000e+00> : vector<2x128xf32>
    %8 = vector.multi_reduction <add>, %7, %cst [2] : vector<2x128x128xf32> to vector<2x128xf32>
    %9 = tpu.iota {dimensions = array<i32: 1>} : vector<2x128xi32>
    %c128_i32 = arith.constant 128 : i32
    %10 = arith.muli %arg0, %c128_i32 : i32
    %11 = vector.broadcast %10 : i32 to vector<2x128xi32>
    %12 = arith.addi %9, %11 : vector<2x128xi32>
    %c8_i32 = arith.constant 8 : i32
    %13 = vector.broadcast %c8_i32 : i32 to vector<2x128xi32>
    %14 = arith.cmpi slt, %12, %13 : vector<2x128xi32>
    %cst_5 = arith.constant -1.000000e+30 : f32
    %15 = vector.broadcast %cst_5 : f32 to vector<2x128xf32>
    %16 = arith.select %14, %8, %15 : vector<2x128xi1>, vector<2x128xf32>
    %c128_i32_6 = arith.constant 128 : i32
    %17 = arith.muli %arg0, %c128_i32_6 : i32
    %18 = tpu.assume_multiple %17, 128 : i32
    %c0_7 = arith.constant 0 : index
    %19 = arith.index_cast %18 : i32 to index
    %20 = vector.load %arg15[%c0_7, %19] : memref<2x128xf32, #tpu.memory_space<vmem>>, vector<2x128xf32>
    tpu.vector_store %arg15[%c0_7, %19], %16 {strides = array<i32>} : memref<2x128xf32, #tpu.memory_space<vmem>>, vector<2x128xf32>,
    %c0_8 = arith.constant 0 : index
    %c0_9 = arith.constant 0 : index
    %21 = vector.load %arg12[%c0_8, %c0_9] : memref<2x1xf32, #tpu.memory_space<vmem>>, vector<2x1xf32>
    %cst_10 = arith.constant dense<0xFF800000> : vector<2xf32>
    %22 = vector.multi_reduction <maximumf>, %16, %cst_10 [1] : vector<2x128xf32> to vector<2xf32>
    %23 = vector.shape_cast %22 : vector<2xf32> to vector<2x1xf32>
    %24 = arith.maximumf %21, %23 : vector<2x1xf32>
    %25 = arith.subf %21, %24 : vector<2x1xf32>
    %26 = math.exp %25 : vector<2x1xf32>
    %27 = vector.broadcast %24 : vector<2x1xf32> to vector<2x128xf32>
    %28 = arith.subf %16, %27 : vector<2x128xf32>
    %29 = math.exp %28 : vector<2x128xf32>
    %c0_11 = arith.constant 0 : index
    %c0_12 = arith.constant 0 : index
    %30 = vector.load %arg13[%c0_11, %c0_12] : memref<2x1xf32, #tpu.memory_space<vmem>>, vector<2x1xf32>
    %31 = arith.mulf %26, %30 : vector<2x1xf32>
    %cst_13 = arith.constant dense<0.000000e+00> : vector<2xf32>
    %32 = vector.multi_reduction <add>, %29, %cst_13 [1] : vector<2x128xf32> to vector<2xf32>
    %33 = vector.shape_cast %32 : vector<2xf32> to vector<2x1xf32>
    %34 = arith.addf %31, %33 : vector<2x1xf32>
    %c0_14 = arith.constant 0 : index
    %c0_15 = arith.constant 0 : index
    %35 = vector.load %arg13[%c0_14, %c0_15] : memref<2x1xf32, #tpu.memory_space<vmem>>, vector<2x1xf32>
    tpu.vector_store %arg13[%c0_14, %c0_15], %34 {strides = array<i32>} : memref<2x1xf32, #tpu.memory_space<vmem>>, vector<2x1xf32>,
    %c0_16 = arith.constant 0 : index
    %c0_17 = arith.constant 0 : index
    %36 = vector.load %arg14[%c0_16, %c0_17] : memref<2x128xf32, #tpu.memory_space<vmem>>, vector<2x128xf32>
    %37 = vector.broadcast %26 : vector<2x1xf32> to vector<2x128xf32>
    %38 = arith.mulf %37, %36 : vector<2x128xf32>
    %39 = vector.shape_cast %29 : vector<2x128xf32> to vector<2x128x1xf32>
    %40 = vector.broadcast %39 : vector<2x128x1xf32> to vector<2x128x128xf32>
    %41 = arith.mulf %40, %4 : vector<2x128x128xf32>
    %cst_18 = arith.constant dense<0.000000e+00> : vector<2x128xf32>
    %42 = vector.multi_reduction <add>, %41, %cst_18 [1] : vector<2x128x128xf32> to vector<2x128xf32>
    %43 = arith.addf %38, %42 : vector<2x128xf32>
    %c0_19 = arith.constant 0 : index
    %c0_20 = arith.constant 0 : index
    %44 = vector.load %arg14[%c0_19, %c0_20] : memref<2x128xf32, #tpu.memory_space<vmem>>, vector<2x128xf32>
    tpu.vector_store %arg14[%c0_19, %c0_20], %43 {strides = array<i32>} : memref<2x128xf32, #tpu.memory_space<vmem>>, vector<2x128xf32>,
    %c0_21 = arith.constant 0 : index
    %c0_22 = arith.constant 0 : index
    %45 = vector.load %arg12[%c0_21, %c0_22] : memref<2x1xf32, #tpu.memory_space<vmem>>, vector<2x1xf32>
    tpu.vector_store %arg12[%c0_21, %c0_22], %24 {strides = array<i32>} : memref<2x1xf32, #tpu.memory_space<vmem>>, vector<2x1xf32>,
    %c0_i32_23 = arith.constant 0 : i32
    %46 = arith.cmpi eq, %arg0, %c0_i32_23 : i32
    %47 = arith.extui %46 : i1 to i32
    %c0_i32_24 = arith.constant 0 : i32
    %48 = arith.cmpi ne, %47, %c0_i32_24 : i32
    scf.if %48 {
      %c0_25 = arith.constant 0 : index
      %c0_26 = arith.constant 0 : index
      %49 = vector.load %arg13[%c0_25, %c0_26] : memref<2x1xf32, #tpu.memory_space<vmem>>, vector<2x1xf32>
      %cst_27 = arith.constant 1.000000e+00 : f32
      %50 = vector.broadcast %cst_27 : f32 to vector<2x1xf32>
      %51 = arith.divf %50, %49 : vector<2x1xf32>
      %c0_28 = arith.constant 0 : index
      %c0_29 = arith.constant 0 : index
      %52 = vector.load %arg15[%c0_28, %c0_29] : memref<2x128xf32, #tpu.memory_space<vmem>>, vector<2x128xf32>
      %c0_30 = arith.constant 0 : index
      %c0_31 = arith.constant 0 : index
      %53 = vector.load %arg12[%c0_30, %c0_31] : memref<2x1xf32, #tpu.memory_space<vmem>>, vector<2x1xf32>
      %54 = vector.broadcast %53 : vector<2x1xf32> to vector<2x128xf32>
      %55 = arith.subf %52, %54 : vector<2x128xf32>
      %56 = math.exp %55 : vector<2x128xf32>
      %57 = vector.broadcast %51 : vector<2x1xf32> to vector<2x128xf32>
      %58 = arith.mulf %56, %57 : vector<2x128xf32>
      %c0_32 = arith.constant 0 : index
      %c0_33 = arith.constant 0 : index
      %59 = vector.load %arg11[%c0_32, %c0_33] : memref<2x128xf32, #tpu.memory_space<vmem>>, vector<2x128xf32>
      tpu.vector_store %arg11[%c0_32, %c0_33], %58 {strides = array<i32>} : memref<2x128xf32, #tpu.memory_space<vmem>>, vector<2x128xf32>,
      %c0_34 = arith.constant 0 : index
      %c0_35 = arith.constant 0 : index
      %60 = vector.load %arg14[%c0_34, %c0_35] : memref<2x128xf32, #tpu.memory_space<vmem>>, vector<2x128xf32>
      %61 = vector.broadcast %51 : vector<2x1xf32> to vector<2x128xf32>
      %62 = arith.mulf %60, %61 : vector<2x128xf32>
      %c0_36 = arith.constant 0 : index
      %c0_37 = arith.constant 0 : index
      %63 = vector.load %arg1[%c0_36, %c0_37] : memref<2x128xf32, #tpu.memory_space<vmem>>, vector<2x128xf32>
      %64 = tpu.concatenate %63, %62 in 1 : vector<2x128xf32>, vector<2x128xf32> -> vector<2x256xf32>
      %c0_38 = arith.constant 0 : index
      %c0_39 = arith.constant 0 : index
      %65 = vector.load %arg4[%c0_38, %c0_39] : memref<256x128xf32, #tpu.memory_space<vmem>>, vector<256x128xf32>
      %cst_40 = arith.constant dense<0.000000e+00> : vector<2x128xf32>
      %66 = tpu.matmul %64, %65, %cst_40 {dimension_numbers = #tpu.dot_dimension_numbers<[1], [0], [0], [1], [0, 0, 1, 1], [], []>} : vector<2x256xf32>, vector<256x128xf32>, vector<2x128xf32> -> vector<2x128xf32>
      %c0_41 = arith.constant 0 : index
      %c0_42 = arith.constant 0 : index
      %67 = vector.load %arg5[%c0_41, %c0_42] : memref<1x128xf32, #tpu.memory_space<vmem>>, vector<1x128xf32>
      %68 = vector.broadcast %67 : vector<1x128xf32> to vector<2x128xf32>
      %69 = arith.addf %66, %68 : vector<2x128xf32>
      %c0_43 = arith.constant 0 : index
      %c0_44 = arith.constant 0 : index
      %70 = vector.load %arg6[%c0_43, %c0_44] : memref<128x384xf32, #tpu.memory_space<vmem>>, vector<128x384xf32>
      %cst_45 = arith.constant dense<0.000000e+00> : vector<2x384xf32>
      %71 = tpu.matmul %69, %70, %cst_45 {dimension_numbers = #tpu.dot_dimension_numbers<[1], [0], [0], [1], [0, 0, 1, 1], [], []>} : vector<2x128xf32>, vector<128x384xf32>, vector<2x384xf32> -> vector<2x384xf32>
      %c0_46 = arith.constant 0 : index
      %c0_47 = arith.constant 0 : index
      %72 = vector.load %arg7[%c0_46, %c0_47] : memref<1x384xf32, #tpu.memory_space<vmem>>, vector<1x384xf32>
      %73 = vector.broadcast %72 : vector<1x384xf32> to vector<2x384xf32>
      %74 = arith.addf %71, %73 : vector<2x384xf32>
      %c0_48 = arith.constant 0 : index
      %c0_49 = arith.constant 0 : index
      %75 = vector.load %arg8[%c0_48, %c0_49] : memref<128x384xf32, #tpu.memory_space<vmem>>, vector<128x384xf32>
      %cst_50 = arith.constant dense<0.000000e+00> : vector<2x384xf32>
      %76 = tpu.matmul %3, %75, %cst_50 {dimension_numbers = #tpu.dot_dimension_numbers<[1], [0], [0], [1], [0, 0, 1, 1], [], []>} : vector<2x128xf32>, vector<128x384xf32>, vector<2x384xf32> -> vector<2x384xf32>
      %c0_51 = arith.constant 0 : index
      %c0_52 = arith.constant 0 : index
      %77 = vector.load %arg9[%c0_51, %c0_52] : memref<1x384xf32, #tpu.memory_space<vmem>>, vector<1x384xf32>
      %78 = vector.broadcast %77 : vector<1x384xf32> to vector<2x384xf32>
      %79 = arith.addf %76, %78 : vector<2x384xf32>
      %80 = vector.extract_strided_slice %74 {offsets = [0, 0], sizes = [2, 128], strides = [1, 1]} : vector<2x384xf32> to vector<2x128xf32>
      %81 = vector.extract_strided_slice %79 {offsets = [0, 0], sizes = [2, 128], strides = [1, 1]} : vector<2x384xf32> to vector<2x128xf32>
      %82 = arith.addf %80, %81 : vector<2x128xf32>
      %83 = arith.negf %82 : vector<2x128xf32>
      %84 = math.exp %83 : vector<2x128xf32>
      %cst_53 = arith.constant 1.000000e+00 : f32
      %85 = vector.broadcast %cst_53 : f32 to vector<2x128xf32>
      %86 = arith.addf %85, %84 : vector<2x128xf32>
      %87 = arith.divf %85, %86 : vector<2x128xf32>
      %88 = vector.extract_strided_slice %74 {offsets = [0, 128], sizes = [2, 128], strides = [1, 1]} : vector<2x384xf32> to vector<2x128xf32>
      %89 = vector.extract_strided_slice %79 {offsets = [0, 128], sizes = [2, 128], strides = [1, 1]} : vector<2x384xf32> to vector<2x128xf32>
      %90 = arith.addf %88, %89 : vector<2x128xf32>
      %91 = arith.negf %90 : vector<2x128xf32>
      %92 = math.exp %91 : vector<2x128xf32>
      %cst_54 = arith.constant 1.000000e+00 : f32
      %93 = vector.broadcast %cst_54 : f32 to vector<2x128xf32>
      %94 = arith.addf %93, %92 : vector<2x128xf32>
      %95 = arith.divf %93, %94 : vector<2x128xf32>
      %96 = vector.extract_strided_slice %74 {offsets = [0, 256], sizes = [2, 128], strides = [1, 1]} : vector<2x384xf32> to vector<2x128xf32>
      %97 = vector.extract_strided_slice %79 {offsets = [0, 256], sizes = [2, 128], strides = [1, 1]} : vector<2x384xf32> to vector<2x128xf32>
      %98 = arith.mulf %87, %97 : vector<2x128xf32>
      %99 = arith.addf %96, %98 : vector<2x128xf32>
      %100 = math.tanh %99 : vector<2x128xf32>
      %cst_55 = arith.constant 1.000000e+00 : f32
      %101 = vector.broadcast %cst_55 : f32 to vector<2x128xf32>
      %102 = arith.subf %101, %95 : vector<2x128xf32>
      %103 = arith.mulf %102, %100 : vector<2x128xf32>
      %104 = arith.mulf %95, %3 : vector<2x128xf32>
      %105 = arith.addf %103, %104 : vector<2x128xf32>
      %c0_56 = arith.constant 0 : index
      %c0_57 = arith.constant 0 : index
      %106 = vector.load %arg10[%c0_56, %c0_57] : memref<2x128xf32, #tpu.memory_space<vmem>>, vector<2x128xf32>
      tpu.vector_store %arg10[%c0_56, %c0_57], %105 {strides = array<i32>} : memref<2x128xf32, #tpu.memory_space<vmem>>, vector<2x128xf32>,
    } else {
    }
    return
  }
  func.func @transform_0(%arg0: i32) -> (i32, i32) {
    %c0_i32 = arith.constant 0 : i32
    %c0_i32_0 = arith.constant 0 : i32
    %c0_i32_1 = arith.constant 0 : i32
    return %c0_i32, %c0_i32_0 : i32, i32
  }
  func.func @transform_1(%arg0: i32) -> (i32, i32) {
    %c0_i32 = arith.constant 0 : i32
    %c0_i32_0 = arith.constant 0 : i32
    %c0_i32_1 = arith.constant 0 : i32
    return %c0_i32, %c0_i32_0 : i32, i32
  }
  func.func @transform_2(%arg0: i32) -> (i32, i32, i32) {
    %c0_i32 = arith.constant 0 : i32
    %c0_i32_0 = arith.constant 0 : i32
    %c0_i32_1 = arith.constant 0 : i32
    return %c0_i32, %arg0, %c0_i32_0 : i32, i32, i32
  }
  func.func @transform_3(%arg0: i32) -> (i32, i32) {
    %c0_i32 = arith.constant 0 : i32
    %c0_i32_0 = arith.constant 0 : i32
    %c0_i32_1 = arith.constant 0 : i32
    return %c0_i32, %c0_i32_0 : i32, i32
  }
  func.func @transform_4(%arg0: i32) -> (i32, i32) {
    %c0_i32 = arith.constant 0 : i32
    %c0_i32_0 = arith.constant 0 : i32
    %c0_i32_1 = arith.constant 0 : i32
    return %c0_i32, %c0_i32_0 : i32, i32
  }
  func.func @transform_5(%arg0: i32) -> (i32, i32) {
    %c0_i32 = arith.constant 0 : i32
    %c0_i32_0 = arith.constant 0 : i32
    %c0_i32_1 = arith.constant 0 : i32
    return %c0_i32, %c0_i32_0 : i32, i32
  }
  func.func @transform_6(%arg0: i32) -> (i32, i32) {
    %c0_i32 = arith.constant 0 : i32
    %c0_i32_0 = arith.constant 0 : i32
    %c0_i32_1 = arith.constant 0 : i32
    return %c0_i32, %c0_i32_0 : i32, i32
  }
  func.func @transform_7(%arg0: i32) -> (i32, i32) {
    %c0_i32 = arith.constant 0 : i32
    %c0_i32_0 = arith.constant 0 : i32
    %c0_i32_1 = arith.constant 0 : i32
    return %c0_i32, %c0_i32_0 : i32, i32
  }
  func.func @transform_8(%arg0: i32) -> (i32, i32) {
    %c0_i32 = arith.constant 0 : i32
    %c0_i32_0 = arith.constant 0 : i32
    %c0_i32_1 = arith.constant 0 : i32
    return %c0_i32, %c0_i32_0 : i32, i32
  }
  func.func @transform_9(%arg0: i32) -> (i32, i32) {
    %c0_i32 = arith.constant 0 : i32
    %c0_i32_0 = arith.constant 0 : i32
    %c0_i32_1 = arith.constant 0 : i32
    return %c0_i32, %c0_i32_0 : i32, i32
  }
  func.func @transform_10(%arg0: i32) -> (i32, i32) {
    %c0_i32 = arith.constant 0 : i32
    %c0_i32_0 = arith.constant 0 : i32
    %c0_i32_1 = arith.constant 0 : i32
    return %c0_i32, %c0_i32_0 : i32, i32
  }
}

</mosaic_0001>

<bundles_post_ra>
// kernel: tpu_custom_call.1
= control target key start
LH: loop header
LB: loop body
LE: loop exit
PB: predicated region body
PF: predicated region fallthrough
CT: control target
= control target key end

     0   :  { %16 = vsyncpa [#allocation7], 0  ;;  %s1905_s0 = inlined_call_operand.hbm [shape: f32[2,128], index: 0, kind: input, shape index: {}]   ;;  %s1906_s1 = inlined_call_operand.hbm [shape: f32[2,128], index: 1, kind: input, shape index: {}]   ;;  %s1907_s2 = inlined_call_operand.hbm [shape: f32[2,128,128], index: 2, kind: input, shape index: {}]   ;;  %s1908_s3 = inlined_call_operand.hbm [shape: f32[256,128], index: 3, kind: input, shape index: {}]   ;;  %s1909_s4 = inlined_call_operand.hbm [shape: f32[1,128], index: 4, kind: input, shape index: {}]   ;;  %s1910_s5 = inlined_call_operand.hbm [shape: f32[128,384], index: 5, kind: input, shape index: {}]   ;;  %s1911_s6 = inlined_call_operand.vmem [shape: f32[1,384], index: 6, kind: input, shape index: {}]   ;;  %s1912_s7 = inlined_call_operand.hbm [shape: f32[128,384], index: 7, kind: input, shape index: {}]   ;;  %s1913_s8 = inlined_call_operand.vmem [shape: f32[1,384], index: 8, kind: input, shape index: {}]   ;;  %s1914_s9 = inlined_call_operand.hbm [shape: f32[2,128], index: 9, kind: output, shape index: {0}]   ;;  %s1915_s10 = inlined_call_operand.hbm [shape: f32[2,128], index: 10, kind: output, shape index: {1}]  }
   0x1   :  { %17 = vsyncpa [#allocation10], 0 }
   0x2   :  { %18 = vsyncpa [#allocation13], 0 }
   0x3   :  { %19 = vsyncpa [#allocation16], 0 }
   0x4   :  { %20 = vsyncpa [#allocation8], 0  ;;  %s38_s15 = sshll.u32 %s1906_s1, 4  ;;  %s39_s15 = int_to_ptr.hbm [resolvable:$true] %s38_s15 }
   0x5   :  { %21 = vsyncpa [#allocation20], 0  ;;  %s1460_s16 = smov [#allocation9]   ;;  %s61_s20 = sshll.u32 %s1908_s3, 4  ;;  %s62_s20 = int_to_ptr.hbm [resolvable:$true] %s61_s20 }
   0x6   :  { %s40_s17 = sshll.u32 %s1460_s16, 4  ;;  %s1461_s21 = smov [#allocation12]   ;;  %s41_s17 = int_to_ptr.vmem [resolvable:$true] %s40_s17 }
   0x7   :  { %43 = dma.hbm_to_vmem [thread:$0]  %s39_s15, 32, %s41_s17, [#allocation10]  }
   0x8   :  { %s63_s22 = sshll.u32 %s1461_s21, 4  ;;  %s85_s25 = sshll.u32 %s1910_s5, 4  ;;  %s64_s22 = int_to_ptr.vmem [resolvable:$true] %s63_s22  ;;  %s86_s25 = int_to_ptr.hbm [resolvable:$true] %s85_s25 }
   0x9   :  { %s1462_s1 = smov 128   ;;  %s1463_s26 = smov 8  }
   0xa   :  { %69 = dma.hbm_to_vmem [thread:$0]  %s62_s20, 4096, %s64_s22, [#allocation13], %s1462_s1, %s1462_s1, %s1463_s26  }
   0xb   :  { %s1464_s27 = smov [#allocation15]   ;;  %s27_s11 = sshll.u32 %s1905_s0, 4  ;;  %s28_s11 = int_to_ptr.hbm [resolvable:$true] %s27_s11 }
   0xc   :  { %s87_s28 = sshll.u32 %s1464_s27, 4  ;;  %s1465_s3 = smov 384   ;;  %s88_s28 = int_to_ptr.vmem [resolvable:$true] %s87_s28 }
   0xd   :  { %s1466_s12 = smov 24   ;;  %s1467_s13 = smov [#allocation6]  }
   0xe   :  { %93 = dma.hbm_to_vmem [thread:$0]  %s86_s25, 6144, %s88_s28, [#allocation16], %s1465_s3, %s1465_s3, %s1466_s12  }
   0xf   :  { %s29_s14 = sshll.u32 %s1467_s13, 4  ;;  %s48_s16 = sshll.u32 %s1907_s2, 4  ;;  %s30_s14 = int_to_ptr.vmem [resolvable:$true] %s29_s14  ;;  %s49_s16 = int_to_ptr.hbm [resolvable:$true] %s48_s16 }
  0x10   :  { %32 = dma.hbm_to_vmem [thread:$0]  %s28_s11, 32, %s30_s14, [#allocation7]  }
  0x11   :  { %s75_s19 = sshll.u32 %s1909_s4, 4  ;;  %s1468_s20 = smov [#allocation11]   ;;  %s76_s19 = int_to_ptr.hbm [resolvable:$true] %s75_s19 }
  0x12   :  { %s50_s21 = sshll.u32 %s1468_s20, 4  ;;  %s1469_s0 = smov [#allocation14]   ;;  %s51_s21 = int_to_ptr.vmem [resolvable:$true] %s50_s21 }
  0x13   :  { %56 = dma.hbm_to_vmem [thread:$0]  %s49_s16, 4096, %s51_s21, [#allocation10], %s1462_s1, %s1462_s1, %s1463_s26  }
  0x14   :  { %s77_s22 = sshll.u32 %s1469_s0, 4  ;;  %s100_s25 = sshll.u32 %s1912_s7, 4  ;;  %s78_s22 = int_to_ptr.vmem [resolvable:$true] %s77_s22  ;;  %s101_s25 = int_to_ptr.hbm [resolvable:$true] %s100_s25 }
  0x15   :  { %80 = dma.hbm_to_vmem [thread:$0]  %s76_s19, 16, %s78_s22, [#allocation13]  }
  0x16   :  { %s1470_s2 = smov [#allocation17]  }
  0x17   :  { %s102_s27 = sshll.u32 %s1470_s2, 4  ;;  %s103_s27 = int_to_ptr.vmem [resolvable:$true] %s102_s27 }
  0x18   :  { %108 = dma.hbm_to_vmem [thread:$0]  %s101_s25, 6144, %s103_s27, [#allocation16], %s1465_s3, %s1465_s3, %s1466_s12  }
  0x19   :  { %1448 = dma.done.wait [#allocation7], 32  }
  0x1a   :  { %1449 = vsyncadd [#allocation7], 4294967264 }
  0x1b   :  { %1450 = dma.done.wait [#allocation10], 4128  }
  0x1c   :  { %1451 = vsyncadd [#allocation10], 4294963168 }
  0x1d   :  { %1452 = dma.done.wait [#allocation13], 4112  }
  0x1e   :  { %1453 = vsyncadd [#allocation13], 4294963184 }
  0x1f   :  { %1454 = dma.done.wait [#allocation16], 12288  }
  0x20   :  { %1455 = vsyncadd [#allocation16], 4294955008  ;;  %v147_v0 = vld [vmem:[#allocation9] sm:$0x3]  ;;  %v1552_v1 = vld [vmem:[#allocation11] sm:$0xff]  ;;  %vm143_vm0 = vcmask 1024  }
  0x21   :  { %v1554_v2 = vld [vmem:[#allocation11 + $0x10] sm:$0xff]  ;;  %v1556_v3 = vperm.slane %v147_v0, 0  ;;  %v181_v4 = vrot.slane %v147_v0, 1  ;;  %v1558_v5 = vld [vmem:[#allocation11 + $0x80] sm:$0xff]  ;;  %v1568_v10 = vld [vmem:[#allocation11 + $0x8] sm:$0xff]  ;;  %vm323_vm1 = vcmask 130112  }
  0x22   :  { %v1570_v11 = vld [vmem:[#allocation11 + $0x90] sm:$0xff]  ;;  %v1572_v12 = vld [vmem:[#allocation11 + $0x88] sm:$0xff]  ;;  %v1580_v16 = vld [vmem:[#allocation11 + $0x18] sm:$0xff]  ;;  %vm327_vm2 = vcmask 195712   ;;  %vm331_vm3 = vcmask 261312   ;;  %vm335_vm4 = vcmask 326912  }
  0x23   :  { %v186_v6 = vmul.f32 %v1556_v3, %v1552_v1  ;;  %v188_v7 = vmul.f32 %v1556_v3, %v1554_v2  ;;  %v1564_v8 = vperm.slane %v181_v4, 0  ;;  %v187_v13 = vmul.f32 %v1556_v3, %v1568_v10  ;;  %v1582_v17 = vld [vmem:[#allocation11 + $0x20] sm:$0xff]  ;;  %v1584_v18 = vld [vmem:[#allocation11 + $0x98] sm:$0xff]  ;;  %v1594_v23 = vld [vmem:[#allocation11 + $0xa8] sm:$0xff]  ;;  %s1474_s4 = smov [#allocation19]   ;;  %s1140_s28 = sshll.u32 %s1915_s10, 4  ;;  %s1141_s28 = int_to_ptr.hbm [resolvable:$true] %s1140_s28 }
  0x24   :  { %v189_v19 = vmul.f32 %v1556_v3, %v1580_v16  ;;  %v190_v20 = vmul.f32 %v1556_v3, %v1582_v17  ;;  %v1592_v22 = vld [vmem:[#allocation11 + $0xa0] sm:$0xff]  ;;  %v1596_v24 = vld [vmem:[#allocation11 + $0x28] sm:$0xff]  ;;  %v1604_v28 = vld [vmem:[#allocation11 + $0x30] sm:$0xff]  ;;  %vm339_vm5 = vcmask 392512   ;;  %vm343_vm6 = vcmask 458112   ;;  %s1138_s7 = sshll.u32 %s1474_s4, 4  ;;  %s1139_s7 = int_to_ptr.vmem [resolvable:$true] %s1138_s7 }
  0x25   :  { %218 = vadd.xlane.f32.xlu0 %v186_v6  ;;  %222 = vadd.xlane.f32.xlu2 %v188_v7  ;;  %v202_v9 = vmul.f32 %v1564_v8, %v1558_v5  ;;  %v204_v14 = vmul.f32 %v1564_v8, %v1570_v11  ;;  %v203_v15 = vmul.f32 %v1564_v8, %v1572_v12  ;;  %v1606_v29 = vld [vmem:[#allocation11 + $0x38] sm:$0xff]  ;;  %v1608_v30 = vld [vmem:[#allocation11 + $0xb0] sm:$0xff]  ;;  %v1618_v35 = vld [vmem:[#allocation11 + $0xc0] sm:$0xff]  ;;  %vm347_vm7 = vcmask 523712   ;;  %s1129_s13 = sshll.u32 %s1914_s9, 4  ;;  %s1130_s13 = int_to_ptr.hbm [resolvable:$true] %s1129_s13 }
  0x26   :  { %v205_v21 = vmul.f32 %v1564_v8, %v1584_v18  ;;  %v206_v25 = vmul.f32 %v1564_v8, %v1592_v22  ;;  %v207_v26 = vmul.f32 %v1564_v8, %v1594_v23  ;;  %v191_v27 = vmul.f32 %v1556_v3, %v1596_v24  ;;  %v1616_v34 = vld [vmem:[#allocation11 + $0xb8] sm:$0xff]  ;;  %v1620_v36 = vld [vmem:[#allocation11 + $0x40] sm:$0xff]  ;;  %v1628_v40 = vld [vmem:[#allocation11 + $0x48] sm:$0xff] }
  0x27   :  { %250 = vadd.xlane.f32.xlu1 %v202_v9  ;;  %v192_v31 = vmul.f32 %v1556_v3, %v1604_v28  ;;  %v193_v32 = vmul.f32 %v1556_v3, %v1606_v29  ;;  %v208_v33 = vmul.f32 %v1564_v8, %v1608_v30  ;;  %v209_v37 = vmul.f32 %v1564_v8, %v1616_v34  ;;  %v1630_v41 = vld [vmem:[#allocation11 + $0x50] sm:$0xff]  ;;  %v1632_v42 = vld [vmem:[#allocation11 + $0xc8] sm:$0xff]  ;;  %v1642_v47 = vld [vmem:[#allocation11 + $0xd8] sm:$0xff] }
  0x28   :  { %v210_v38 = vmul.f32 %v1564_v8, %v1618_v35  ;;  %v194_v39 = vmul.f32 %v1556_v3, %v1620_v36  ;;  %v195_v43 = vmul.f32 %v1556_v3, %v1628_v40  ;;  %v196_v44 = vmul.f32 %v1556_v3, %v1630_v41  ;;  %v1640_v46 = vld [vmem:[#allocation11 + $0xd0] sm:$0xff]  ;;  %1926 = vst [vmem:[#allocation28_spill] sm:$0xff] %v1642_v47  ;;  %v1644_v48 = vld [vmem:[#allocation11 + $0x58] sm:$0xff]  ;;  %v1652_v52 = vld [vmem:[#allocation11 + $0x60] sm:$0xff] }
  0x29   :  { %v211_v45 = vmul.f32 %v1564_v8, %v1632_v42  ;;  %1925 = vst [vmem:[#allocation27_spill] sm:$0xff] %v1640_v46  ;;  %v212_v49 = vmul.f32 %v1564_v8, %v1640_v46  ;;  %v213_v50 = vmul.f32 %v1564_v8, %v1642_v47  ;;  %v197_v51 = vmul.f32 %v1556_v3, %v1644_v48  ;;  %v1654_v53 = vld [vmem:[#allocation11 + $0x68] sm:$0xff]  ;;  %v1656_v54 = vld [vmem:[#allocation11 + $0xe0] sm:$0xff]  ;;  %v1666_v59 = vld [vmem:[#allocation11 + $0xf0] sm:$0xff] }
  0x2a   :  { %1927 = vst [vmem:[#allocation29_spill] sm:$0xff] %v1656_v54  ;;  %v198_v55 = vmul.f32 %v1556_v3, %v1652_v52  ;;  %v199_v56 = vmul.f32 %v1556_v3, %v1654_v53  ;;  %v214_v57 = vmul.f32 %v1564_v8, %v1656_v54  ;;  %v1664_v58 = vld [vmem:[#allocation11 + $0xe8] sm:$0xff]  ;;  %v1668_v60 = vld [vmem:[#allocation11 + $0x70] sm:$0xff]  ;;  %v216_v62 = vmul.f32 %v1564_v8, %v1666_v59  ;;  %v1676_v0 = vld [vmem:[#allocation11 + $0x78] sm:$0xff] }
  0x2b   :  { %1928 = vst [vmem:[#allocation30_spill] sm:$0xff] %v1664_v58  ;;  %v215_v61 = vmul.f32 %v1564_v8, %v1664_v58  ;;  %v200_v63 = vmul.f32 %v1556_v3, %v1668_v60  ;;  %v1678_v4 = vld [vmem:[#allocation11 + $0xf8] sm:$0xff]  ;;  %v201_v6 = vmul.f32 %v1556_v3, %v1676_v0  ;;  %vm351_vm8 = vcmask 589312  }
  0x2c   :  { %1929 = vst [vmem:[#allocation31_spill] sm:$0xff] %v1666_v59  ;;  %v217_v7 = vmul.f32 %v1564_v8, %v1678_v4  ;;  %vm355_vm9 = vcmask 654912   ;;  %vm359_vm10 = vcmask 720512   ;;  %vm363_vm11 = vcmask 786112  }
  0x2d   :  { %220 = vadd.xlane.f32.xlu0 %v187_v13  ;;  %254 = vadd.xlane.f32.xlu2 %v204_v14  ;;  %1930 = vst [vmem:[#allocation32_spill] sm:$0xff] %v1668_v60  ;;  %vm367_vm12 = vcmask 851712   ;;  %vm371_vm13 = vcmask 917312   ;;  %vm375_vm14 = vcmask 982912   ;;  %vm379_vm15 = vcmask 1048512  }
  0x2e   :  { %1931 = vst [vmem:[#allocation33_spill] sm:$0xff] %v1676_v0 }
  0x2f   :  { %252 = vadd.xlane.f32.xlu1 %v203_v15  ;;  %1932 = vst [vmem:[#allocation34_spill] sm:$0xff] %v1678_v4 }
  0x35   :  { %224 = vadd.xlane.f32.xlu0 %v189_v19  ;;  %226 = vadd.xlane.f32.xlu2 %v190_v20 }
  0x37   :  { %256 = vadd.xlane.f32.xlu1 %v205_v21 }
  0x3d   :  { %258 = vadd.xlane.f32.xlu0 %v206_v25  ;;  %260 = vadd.xlane.f32.xlu2 %v207_v26 }
  0x3f   :  { %228 = vadd.xlane.f32.xlu1 %v191_v27 }
  0x45   :  { %230 = vadd.xlane.f32.xlu0 %v192_v31  ;;  %232 = vadd.xlane.f32.xlu2 %v193_v32 }
  0x47   :  { %262 = vadd.xlane.f32.xlu1 %v208_v33 }
  0x4d   :  { %264 = vadd.xlane.f32.xlu0 %v209_v37  ;;  %266 = vadd.xlane.f32.xlu2 %v210_v38 }
  0x4f   :  { %234 = vadd.xlane.f32.xlu1 %v194_v39 }
  0x55   :  { %236 = vadd.xlane.f32.xlu0 %v195_v43  ;;  %238 = vadd.xlane.f32.xlu2 %v196_v44  ;;  %v1916_v43 = vlaneseq }
  0x57   :  { %268 = vadd.xlane.f32.xlu1 %v211_v45 }
  0x5d   :  { %270 = vadd.xlane.f32.xlu0 %v212_v49  ;;  %272 = vadd.xlane.f32.xlu2 %v213_v50  ;;  %v1709_v50 = vand.u32 127, %v1916_v43 }
  0x5f   :  { %240 = vadd.xlane.f32.xlu1 %v197_v51  ;;  %v321_v51 = vadd.s32 4294967288, %v1709_v50  ;;  %v333_v54 = vadd.s32 4294967264, %v1709_v50  ;;  %v341_v60 = vadd.s32 4294967248, %v1709_v50 }
  0x65   :  { %242 = vadd.xlane.f32.xlu0 %v198_v55  ;;  %244 = vadd.xlane.f32.xlu2 %v199_v56  ;;  %v325_v55 = vadd.s32 4294967280, %v1709_v50  ;;  %v329_v56 = vadd.s32 4294967272, %v1709_v50 }
  0x67   :  { %274 = vadd.xlane.f32.xlu1 %v214_v57 }
  0x6d   :  { %276 = vadd.xlane.f32.xlu0 %v215_v61  ;;  %278 = vadd.xlane.f32.xlu2 %v216_v62 }
  0x6f   :  { %246 = vadd.xlane.f32.xlu1 %v200_v63 }
  0x75   :  { %248 = vadd.xlane.f32.xlu0 %v201_v6 }
  0x77   :  { %280 = vadd.xlane.f32.xlu1 %v217_v7  ;;  %v1471_v7 = vmov -1e+30  }
  0x78   :  { %144 = vst.msk [vmem:[#allocation2] sm:$0x3] %vm143_vm0, %v1471_v7 }
  0x98   :  { %v219_v9 = vpop.xlane.xlu0 %218  ;;  %v223_v13 = vpop.xlane.xlu2 %222 }
  0x99   :  { %v320_v43 = vperm.slane %v219_v9, %v1709_v50  ;;  %v326_v59 = vperm.slane %v223_v13, %v325_v55 }
  0x9a   :  { %v251_v14 = vpop.xlane.xlu1 %250 }
  0x9b   :  { %v381_v4 = vperm.slane %v251_v14, %v1709_v50 }
  0xa0   :  { %v221_v15 = vpop.xlane.xlu0 %220  ;;  %v255_v19 = vpop.xlane.xlu2 %254 }
  0xa1   :  { %v322_v61 = vperm.slane %v221_v15, %v321_v51  ;;  %v384_v58 = vperm.slane %v255_v19, %v325_v55  ;;  %v337_v15 = vadd.s32 4294967256, %v1709_v50  ;;  %v345_v19 = vadd.s32 4294967240, %v1709_v50 }
  0xa2   :  { %v253_v20 = vpop.xlane.xlu1 %252 }
  0xa3   :  { %v382_v62 = vperm.slane %v253_v20, %v321_v51  ;;  %v324_v20 = vsel %vm323_vm1, %v322_v61, %v320_v43 }
  0xa4   :  { %v328_v9 = vsel %vm327_vm2, %v326_v59, %v324_v20  ;;  %v349_v59 = vadd.s32 4294967232, %v1709_v50 }
  0xa5   :  { %v383_v51 = vsel %vm323_vm1, %v382_v62, %v381_v4  ;;  %vm412_vm1 = vcmask 1041409  }
  0xa6   :  { %v385_v13 = vsel %vm327_vm2, %v384_v58, %v383_v51  ;;  %v361_v51 = vadd.s32 4294967208, %v1709_v50  ;;  %vm287_vm2 = vcmp.lt.s32.totalorder %v1709_v50, 8 }
  0xa8   :  { %v225_v21 = vpop.xlane.xlu0 %224  ;;  %v1684_v25 = vpop.xlane.xlu2 %226 }
  0xa9   :  { %v330_v47 = vperm.slane %v225_v21, %v329_v56  ;;  %v334_v14 = vperm.slane %v1684_v25, %v333_v54  ;;  %v353_v25 = vadd.s32 4294967224, %v1709_v50 }
  0xaa   :  { %v257_v26 = vpop.xlane.xlu1 %256 }
  0xab   :  { %v386_v0 = vperm.slane %v257_v26, %v329_v56  ;;  %v332_v7 = vsel %vm331_vm3, %v330_v47, %v328_v9 }
  0xad   :  { %v387_v43 = vsel %vm331_vm3, %v386_v0, %v385_v13  ;;  %v336_v0 = vsel %vm335_vm4, %v334_v14, %v332_v7  ;;  %vm421_vm3 = vcmask 1041408  }
  0xb0   :  { %v259_v27 = vpop.xlane.xlu0 %258  ;;  %v1686_v31 = vpop.xlane.xlu2 %260 }
  0xb1   :  { %v388_v46 = vperm.slane %v259_v27, %v333_v54  ;;  %v390_v4 = vperm.slane %v1686_v31, %v337_v15 }
  0xb2   :  { %v1688_v32 = vpop.xlane.xlu1 %228 }
  0xb3   :  { %v338_v21 = vperm.slane %v1688_v32, %v337_v15  ;;  %v389_v26 = vsel %vm335_vm4, %v388_v46, %v387_v43 }
  0xb4   :  { %v391_v31 = vsel %vm339_vm5, %v390_v4, %v389_v26 }
  0xb5   :  { %v340_v46 = vsel %vm339_vm5, %v338_v21, %v336_v0 }
  0xb8   :  { %v1690_v3 = vpop.xlane.xlu0 %230  ;;  %v1692_v8 = vpop.xlane.xlu2 %232 }
  0xb9   :  { %v342_v27 = vperm.slane %v1690_v3, %v341_v60  ;;  %v346_v32 = vperm.slane %v1692_v8, %v345_v19  ;;  %v365_v8 = vadd.s32 4294967200, %v1709_v50 }
  0xba   :  { %v1694_v33 = vpop.xlane.xlu1 %262 }
  0xbb   :  { %v392_v56 = vperm.slane %v1694_v33, %v341_v60  ;;  %v357_v60 = vadd.s32 4294967216, %v1709_v50  ;;  %v344_v3 = vsel %vm343_vm6, %v342_v27, %v340_v46 }
  0xbc   :  { %v348_v13 = vsel %vm347_vm7, %v346_v32, %v344_v3 }
  0xbd   :  { %v393_v33 = vsel %vm343_vm6, %v392_v56, %v391_v31  ;;  %v373_v56 = vadd.s32 4294967184, %v1709_v50 }
  0xc0   :  { %v1696_v37 = vpop.xlane.xlu0 %264  ;;  %v1698_v38 = vpop.xlane.xlu2 %266 }
  0xc1   :  { %v394_v58 = vperm.slane %v1696_v37, %v345_v19  ;;  %v396_v61 = vperm.slane %v1698_v38, %v349_v59 }
  0xc2   :  { %v1700_v39 = vpop.xlane.xlu1 %234 }
  0xc3   :  { %v350_v37 = vperm.slane %v1700_v39, %v349_v59  ;;  %v395_v62 = vsel %vm347_vm7, %v394_v58, %v393_v33 }
  0xc4   :  { %v397_v38 = vsel %vm351_vm8, %v396_v61, %v395_v62 }
  0xc5   :  { %v352_v39 = vsel %vm351_vm8, %v350_v37, %v348_v13  ;;  %v1473_v13 = vmov 0.0  }
  0xc6   :  { %145 = vst.msk [vmem:[#allocation3] sm:$0x3] %vm143_vm0, %v1473_v13 }
  0xc7   :  { %146 = vst [vmem:[#allocation4] sm:$0x3] %v1473_v13 }
  0xc8   :  { %v1702_v44 = vpop.xlane.xlu0 %236  ;;  %v1704_v45 = vpop.xlane.xlu2 %238 }
  0xc9   :  { %v354_v15 = vperm.slane %v1702_v44, %v353_v25  ;;  %v358_v44 = vperm.slane %v1704_v45, %v357_v60  ;;  %v377_v45 = vadd.s32 4294967176, %v1709_v50 }
  0xca   :  { %v1706_v49 = vpop.xlane.xlu1 %268 }
  0xcb   :  { %v398_v20 = vperm.slane %v1706_v49, %v353_v25  ;;  %v369_v49 = vadd.s32 4294967192, %v1709_v50  ;;  %v356_v7 = vsel %vm355_vm9, %v354_v15, %v352_v39 }
  0xcc   :  { %v360_v25 = vsel %vm359_vm10, %v358_v44, %v356_v7 }
  0xcd   :  { %v399_v43 = vsel %vm355_vm9, %v398_v20, %v397_v38  ;;  %v1769_v38 = vld [vmem:[#allocation2] sm:$0x3] }
  0xd0   :  { %v1714_v57 = vpop.xlane.xlu0 %270  ;;  %v1716_v63 = vpop.xlane.xlu2 %272 }
  0xd1   :  { %v400_v9 = vperm.slane %v1714_v57, %v357_v60  ;;  %v402_v57 = vperm.slane %v1716_v63, %v361_v51 }
  0xd2   :  { %v1718_v6 = vpop.xlane.xlu1 %240 }
  0xd3   :  { %v362_v4 = vperm.slane %v1718_v6, %v361_v51  ;;  %v401_v21 = vsel %vm359_vm10, %v400_v9, %v399_v43 }
  0xd4   :  { %v403_v0 = vsel %vm363_vm11, %v402_v57, %v401_v21 }
  0xd5   :  { %v364_v31 = vsel %vm363_vm11, %v362_v4, %v360_v25 }
  0xd8   :  { %v243_v55 = vpop.xlane.xlu0 %242  ;;  %v245_v47 = vpop.xlane.xlu2 %244 }
  0xd9   :  { %v366_v26 = vperm.slane %v243_v55, %v365_v8  ;;  %v370_v63 = vperm.slane %v245_v47, %v369_v49 }
  0xda   :  { %v275_v54 = vpop.xlane.xlu1 %274 }
  0xdb   :  { %v404_v27 = vperm.slane %v275_v54, %v365_v8  ;;  %v368_v6 = vsel %vm367_vm12, %v366_v26, %v364_v31 }
  0xdc   :  { %v372_v61 = vsel %vm371_vm13, %v370_v63, %v368_v6 }
  0xdd   :  { %v405_v46 = vsel %vm367_vm12, %v404_v27, %v403_v0 }
  0xe0   :  { %v277_v14 = vpop.xlane.xlu0 %276  ;;  %v279_v58 = vpop.xlane.xlu2 %278 }
  0xe1   :  { %v406_v59 = vperm.slane %v277_v14, %v369_v49  ;;  %v408_v32 = vperm.slane %v279_v58, %v373_v56  ;;  %v1472_v14 = vmov 0   ;;  %v1933_v49 = vlaneseq }
  0xe2   :  { %v247_v19 = vpop.xlane.xlu1 %246  ;;  %1177 = vset.pattern.permute.xlu0 %v1472_v14 }
  0xe3   :  { %v374_v55 = vperm.slane %v247_v19, %v373_v56  ;;  %v407_v60 = vsel %vm371_vm13, %v406_v59, %v405_v46  ;;  %v1780_v19 = vshrl.u32 %v1933_v49, 7 }
  0xe4   :  { %v409_v62 = vsel %vm375_vm14, %v408_v32, %v407_v60 }
  0xe5   :  { %v376_v15 = vsel %vm375_vm14, %v374_v55, %v372_v61  ;;  %1178 = vset.pattern.permute.xlu2 %v1780_v19  ;;  %v467_v7 = vadd.s32 16, %v1780_v19  ;;  %v461_v43 = vadd.s32 8, %v1780_v19  ;;  %v485_v58 = vadd.s32 40, %v1780_v19 }
  0xe6   :  { %v473_v25 = vadd.s32 24, %v1780_v19  ;;  %v515_v0 = vadd.s32 80, %v1780_v19  ;;  %v479_v31 = vadd.s32 32, %v1780_v19  ;;  %v527_v63 = vadd.s32 96, %v1780_v19 }
  0xe7   :  { %1179 = vset.pattern.permute.xlu1 %v461_v43  ;;  %v545_v6 = vadd.s32 120, %v1780_v19  ;;  %v491_v46 = vadd.s32 48, %v1780_v19  ;;  %v503_v32 = vadd.s32 64, %v1780_v19 }
  0xe8   :  { %v249_v54 = vpop.xlane.xlu0 %248 }
  0xe9   :  { %v378_v3 = vperm.slane %v249_v54, %v377_v45  ;;  %v509_v54 = vadd.s32 72, %v1780_v19 }
  0xea   :  { %v281_v33 = vpop.xlane.xlu1 %280 }
  0xeb   :  { %v410_v37 = vperm.slane %v281_v33, %v377_v45  ;;  %v380_v20 = vsel %vm379_vm15, %v378_v3, %v376_v15  ;;  %v497_v45 = vadd.s32 56, %v1780_v19  ;;  %v437_v3 = vld [vmem:[#allocation3] sm:$0x3]  ;;  %v533_v15 = vadd.s32 104, %v1780_v19 }
  0xed   :  { %v411_v51 = vsel %vm379_vm15, %v410_v37, %v409_v62  ;;  %v521_v62 = vadd.s32 88, %v1780_v19 }
  0xee   :  { %v413_v47 = vsel %vm412_vm1, %v411_v51, %v380_v20  ;;  %v539_v20 = vadd.s32 112, %v1780_v19 }
  0xef   :  { %v415_v9 = vsel %vm287_vm2, %v413_v47, -1e+30 }
  0xf0   :  { %v422_v8 = vsel %vm421_vm3, %v415_v9, -inf  ;;  %419 = vst [vmem:[#allocation5] sm:$0x3] %v415_v9 }
  0xf1   :  { %423 = vmax.xlane.f32.xlu2 %v422_v8 }
 0x164   :  { %v424_v50 = vpop.xlane.xlu2 %423 }
 0x165   :  { %v1772_v39 = vmax.f32 %v1769_v38, %v424_v50 }
 0x167   :  { %v426_v44 = vsub.f32 %v1769_v38, %v1772_v39  ;;  %726 = vst.msk [vmem:[#allocation2] sm:$0x3] %vm143_vm0, %v1772_v39  ;;  %431 = vperm.xlu0 %1177, %v1772_v39  }
 0x169   :  { %v427_v55 = vmul.f32 1.442695, %v426_v44 }
 0x16f   :  { %1182 = vset.pattern.permute.xlu0 %v467_v7 }
 0x1d9   :  { %v432_v57 = vpop.permute.xlu0 %431 }
 0x1da   :  { %v434_v4 = vsub.f32 %v415_v9, %v432_v57 }
 0x1dc   :  { %v435_v21 = vmul.f32 1.442695, %v434_v4  ;;  %v747_v4 = vld [vmem:[#allocation2] sm:$0x3] }
 0x1de   :  { %1213 = vpow2.f32 %v435_v21 }
 0x1df   :  { %1215 = vpow2.f32 %v427_v55 }
 0x1e4   :  { %v1214_v26 = vpop.eup %1213 }
 0x1e5   :  { %v1785_v27 = vperm.slane %v1214_v26, 0  ;;  %v1787_v56 = vperm.slane %v1214_v26, 1  ;;  %v439_v59 = vsel %vm421_vm3, %v1214_v26, 0.0  ;;  %v1216_v60 = vpop.eup %1215 }
 0x1e6   :  { %440 = vadd.xlane.f32.xlu1 %v439_v59  ;;  %v438_v33 = vmul.f32 %v1216_v60, %v437_v3 }
 0x1e7   :  { %566 = vperm.xlu0 %1182, %v1787_v56   ;;  %457 = vperm.xlu2 %1178, %v1785_v27  }
 0x1ef   :  { %1187 = vset.pattern.permute.xlu0 %v485_v58  ;;  %554 = vperm.xlu2 %1178, %v1787_v56  }
 0x1f7   :  { %487 = vperm.xlu0 %1187, %v1785_v27   ;;  %1180 = vset.pattern.permute.xlu2 %v461_v43 }
 0x1ff   :  { %1192 = vset.pattern.permute.xlu0 %v497_v45  ;;  %560 = vperm.xlu2 %1180, %v1787_v56  }
 0x200   :  { %463 = vperm.xlu1 %1179, %v1785_v27  }
 0x207   :  { %596 = vperm.xlu0 %1192, %v1787_v56   ;;  %1183 = vset.pattern.permute.xlu2 %v473_v25 }
 0x208   :  { %1181 = vset.pattern.permute.xlu1 %v467_v7 }
 0x20f   :  { %1197 = vset.pattern.permute.xlu0 %v515_v0  ;;  %475 = vperm.xlu2 %1183, %v1785_v27  }
 0x210   :  { %469 = vperm.xlu1 %1181, %v1785_v27  }
 0x217   :  { %517 = vperm.xlu0 %1197, %v1785_v27   ;;  %1185 = vset.pattern.permute.xlu2 %v479_v31 }
 0x218   :  { %1184 = vset.pattern.permute.xlu1 %v473_v25 }
 0x21f   :  { %1202 = vset.pattern.permute.xlu0 %v527_v63  ;;  %481 = vperm.xlu2 %1185, %v1785_v27  }
 0x220   :  { %572 = vperm.xlu1 %1184, %v1787_v56  }
 0x227   :  { %626 = vperm.xlu0 %1202, %v1787_v56   ;;  %1188 = vset.pattern.permute.xlu2 %v485_v58 }
 0x228   :  { %1186 = vset.pattern.permute.xlu1 %v479_v31 }
 0x22f   :  { %1207 = vset.pattern.permute.xlu0 %v545_v6  ;;  %584 = vperm.xlu2 %1188, %v1787_v56  }
 0x230   :  { %578 = vperm.xlu1 %1186, %v1787_v56  }
 0x237   :  { %547 = vperm.xlu0 %1207, %v1785_v27   ;;  %1190 = vset.pattern.permute.xlu2 %v491_v46 }
 0x238   :  { %1189 = vset.pattern.permute.xlu1 %v491_v46 }
 0x23f   :  { %590 = vperm.xlu2 %1190, %v1787_v56   ;;  %1211 = vset.pattern.permute.xlu0 %v1472_v14 }
 0x240   :  { %493 = vperm.xlu1 %1189, %v1785_v27  }
 0x241   :  { %v458_v38 = vpop.permute.xlu2 %457 }
 0x247   :  { %1193 = vset.pattern.permute.xlu2 %v503_v32 }
 0x248   :  { %1191 = vset.pattern.permute.xlu1 %v497_v45 }
 0x249   :  { %v555_v43 = vpop.permute.xlu2 %554 }
 0x24f   :  { %505 = vperm.xlu2 %1193, %v1785_v27  }
 0x250   :  { %499 = vperm.xlu1 %1191, %v1785_v27  }
 0x257   :  { %1195 = vset.pattern.permute.xlu2 %v509_v54 }
 0x258   :  { %1194 = vset.pattern.permute.xlu1 %v503_v32 }
 0x259   :  { %v441_v61 = vpop.xlane.xlu1 %440  ;;  %v561_v21 = vpop.permute.xlu2 %560 }
 0x25a   :  { %v442_v37 = vadd.f32 %v441_v61, %v438_v33  ;;  %v567_v55 = vpop.permute.xlu0 %566 }
 0x25c   :  { %444 = vst.msk [vmem:[#allocation3] sm:$0x3] %vm143_vm0, %v442_v37 }
 0x25f   :  { %511 = vperm.xlu2 %1195, %v1785_v27  }
 0x260   :  { %602 = vperm.xlu1 %1194, %v1787_v56  }
 0x263   :  { %v730_v51 = vld [vmem:[#allocation3] sm:$0x3] }
 0x264   :  { %1217 = vrcp.f32 %v730_v51  ;;  %v742_v39 = vand.u32 2147483648, %v730_v51  ;;  %vm736_vm4 = vweird.f32 %v730_v51  ;;  %v740_v44 = vand.u32 2147483647, %v730_v51 }
 0x266   :  { %v743_v19 = vor.u32 1.1754944e-38, %v742_v39  ;;  %vm741_vm6 = vcmp.eq.f32.partialorder %v740_v44, 8.507059e+37 }
 0x267   :  { %1198 = vset.pattern.permute.xlu2 %v515_v0 }
 0x268   :  { %1196 = vset.pattern.permute.xlu1 %v509_v54 }
 0x26a   :  { %v1218_v47 = vpop.eup %1217 }
 0x26b   :  { %v732_v9 = vmul.f32 %v1218_v47, %v730_v51  ;;  %vm737_vm0 = vweird.f32 %v1218_v47 }
 0x26c   :  { %vm738_vm5 = vmor %vm736_vm4, %vm737_vm0 }
 0x26d   :  { %v733_v8 = vsub.f32 1.0, %v732_v9 }
 0x26f   :  { %614 = vperm.xlu2 %1198, %v1787_v56   ;;  %v734_v13 = vmul.f32 %v1218_v47, %v733_v8 }
 0x270   :  { %608 = vperm.xlu1 %1196, %v1787_v56  }
 0x271   :  { %v735_v50 = vadd.f32 %v1218_v47, %v734_v13 }
 0x272   :  { %v464_v57 = vpop.permute.xlu1 %463 }
 0x273   :  { %v739_v49 = vsel %vm738_vm5, %v1218_v47, %v735_v50  ;;  %v664_v50 = vmul.f32 %v567_v55, %v1570_v11  ;;  %v792_v55 = vld [vmem:[#allocation12 + $0xd0] sm:$0xff] }
 0x274   :  { %v744_v7 = vsel %vm741_vm6, %v743_v19, %v739_v49 }
 0x277   :  { %1200 = vset.pattern.permute.xlu2 %v521_v62 }
 0x278   :  { %1199 = vset.pattern.permute.xlu1 %v521_v62  ;;  %v781_v62 = vld [vmem:[#allocation12 + $0x78] sm:$0xff] }
 0x279   :  { %802 = vmatpush.msra.mxu0 %v781_v62 }
 0x27f   :  { %620 = vperm.xlu2 %1200, %v1787_v56  }
 0x280   :  { %523 = vperm.xlu1 %1199, %v1785_v27  }
 0x282   :  { %v470_v26 = vpop.permute.xlu1 %469 }
 0x283   :  { %v648_v46 = vmul.f32 %v470_v26, %v1554_v2  ;;  %v778_v26 = vld [vmem:[#allocation12 + $0x60] sm:$0xff] }
 0x287   :  { %1203 = vset.pattern.permute.xlu2 %v533_v15 }
 0x288   :  { %1201 = vset.pattern.permute.xlu1 %v527_v63  ;;  %v647_v63 = vmul.f32 %v464_v57, %v1568_v10  ;;  %v779_v57 = vld [vmem:[#allocation12 + $0x68] sm:$0xff] }
 0x28f   :  { %535 = vperm.xlu2 %1203, %v1785_v27  }
 0x290   :  { %529 = vperm.xlu1 %1201, %v1785_v27  }
 0x297   :  { %1205 = vset.pattern.permute.xlu2 %v539_v20 }
 0x298   :  { %1204 = vset.pattern.permute.xlu1 %v533_v15  ;;  %v488_v15 = vpop.permute.xlu0 %487 }
 0x299   :  { %v651_v2 = vmul.f32 %v488_v15, %v1596_v24 }
 0x29f   :  { %541 = vperm.xlu2 %1205, %v1785_v27   ;;  %v476_v27 = vpop.permute.xlu2 %475 }
 0x2a0   :  { %632 = vperm.xlu1 %1204, %v1787_v56   ;;  %v649_v3 = vmul.f32 %v476_v27, %v1580_v16  ;;  %v662_v16 = vmul.f32 %v555_v43, %v1558_v5  ;;  %v780_v5 = vld [vmem:[#allocation12 + $0x70] sm:$0xff] }
 0x2a1   :  { %803 = vmatpush.msra.mxu0 %v780_v5  ;;  %v785_v5 = vld [vmem:[#allocation12 + $0x98] sm:$0xff] }
 0x2a3   :  { %804 = vmatpush.msra.mxu0 %v779_v57  ;;  %v1937_v57 = vld [vmem:[#allocation28_spill] sm:$0xff] }
 0x2a5   :  { %805 = vmatpush.msra.mxu0 %v778_v26  ;;  %v765_v26 = vld [vmem:[#allocation6] sm:$0x3] }
 0x2a7   :  { %1208 = vset.pattern.permute.xlu2 %v545_v6  ;;  %v482_v59 = vpop.permute.xlu2 %481  ;;  %v646_v6 = vmul.f32 %v458_v38, %v1552_v1  ;;  %v663_v1 = vmul.f32 %v561_v21, %v1572_v12  ;;  %v597_v38 = vpop.permute.xlu0 %596 }
 0x2a8   :  { %1206 = vset.pattern.permute.xlu1 %v539_v20  ;;  %v650_v37 = vmul.f32 %v482_v59, %v1582_v17  ;;  %v777_v59 = vld [vmem:[#allocation12 + $0x58] sm:$0xff] }
 0x2a9   :  { %v678_v32 = vadd.f32 %v647_v63, %v646_v6  ;;  %v699_v17 = vadd.f32 %v663_v1, %v662_v16  ;;  %806 = vmatpush.msra.mxu0 %v777_v59  ;;  %v793_v6 = vld [vmem:[#allocation12 + $0xd8] sm:$0xff] }
 0x2aa   :  { %v1939_v59 = vld [vmem:[#allocation30_spill] sm:$0xff] }
 0x2ab   :  { %v679_v54 = vadd.f32 %v678_v32, %v648_v46  ;;  %v700_v49 = vadd.f32 %v699_v17, %v664_v50  ;;  %v775_v32 = vld [vmem:[#allocation12 + $0x48] sm:$0xff] }
 0x2ad   :  { %v680_v61 = vadd.f32 %v679_v54, %v649_v3  ;;  %v774_v3 = vld [vmem:[#allocation12 + $0x40] sm:$0xff] }
 0x2af   :  { %644 = vperm.xlu2 %1208, %v1787_v56   ;;  %v585_v45 = vpop.permute.xlu2 %584  ;;  %v681_v10 = vadd.f32 %v680_v61, %v650_v37  ;;  %v518_v21 = vpop.permute.xlu0 %517  ;;  %v669_v61 = vmul.f32 %v597_v38, %v1616_v34 }
 0x2b0   :  { %638 = vperm.xlu1 %1206, %v1787_v56   ;;  %v573_v56 = vpop.permute.xlu1 %572 }
 0x2b1   :  { %v682_v9 = vadd.f32 %v681_v10, %v651_v2  ;;  %v665_v39 = vmul.f32 %v573_v56, %v1584_v18  ;;  %v772_v2 = vld [vmem:[#allocation12 + $0x30] sm:$0xff] }
 0x2b3   :  { %v701_v43 = vadd.f32 %v700_v49, %v665_v39  ;;  %v769_v39 = vld [vmem:[#allocation12 + $0x18] sm:$0xff] }
 0x2b4   :  { %v1936_v49 = vld [vmem:[#allocation33_spill] sm:$0xff] }
 0x2b7   :  { %1210 = vset.pattern.permute.xlu2 %v1472_v14  ;;  %v1839_v0 = vpop.permute.xlu2 %590 }
 0x2b8   :  { %1209 = vset.pattern.permute.xlu1 %v1472_v14  ;;  %758 = vperm.xlu2 %1210, %v744_v7   ;;  %v579_v58 = vpop.permute.xlu1 %578  ;;  %v797_v7 = vld [vmem:[#allocation12 + $0xf8] sm:$0xff]  ;;  %v668_v46 = vmul.f32 %v1839_v0, %v1608_v30  ;;  %v790_v0 = vld [vmem:[#allocation12 + $0xc0] sm:$0xff] }
 0x2b9   :  { %448 = vperm.xlu1 %1209, %v1216_v60   ;;  %v666_v24 = vmul.f32 %v579_v58, %v1592_v22  ;;  %822 = vmatpush.msra.mxu1 %v797_v7  ;;  %v795_v22 = vld [vmem:[#allocation12 + $0xe8] sm:$0xff]  ;;  %v794_v58 = vld [vmem:[#allocation12 + $0xe0] sm:$0xff] }
 0x2bb   :  { %v702_v11 = vadd.f32 %v701_v43, %v666_v24  ;;  %v767_v43 = vld [vmem:[#allocation12 + $0x8] sm:$0xff] }
 0x2bf   :  { %v506_v14 = vpop.permute.xlu2 %505 }
 0x2c0   :  { %v494_v25 = vpop.permute.xlu1 %493 }
 0x2c1   :  { %750 = vperm.xlu1 %1209, %v747_v4   ;;  %v652_v51 = vmul.f32 %v494_v25, %v1604_v28  ;;  %v654_v28 = vmul.f32 %v506_v14, %v1620_v36  ;;  %v796_v4 = vld [vmem:[#allocation12 + $0xf0] sm:$0xff]  ;;  %v667_v36 = vmul.f32 %v585_v45, %v1594_v23  ;;  %v656_v25 = vmul.f32 %v518_v21, %v1630_v41 }
 0x2c2   :  { %823 = vmatpush.msra.mxu1 %v796_v4  ;;  %v776_v14 = vld [vmem:[#allocation12 + $0x50] sm:$0xff] }
 0x2c3   :  { %v683_v13 = vadd.f32 %v682_v9, %v652_v51  ;;  %807 = vmatpush.msra.mxu0 %v776_v14  ;;  %v789_v51 = vld [vmem:[#allocation12 + $0xb8] sm:$0xff] }
 0x2c4   :  { %824 = vmatpush.msra.mxu1 %v795_v22  ;;  %v782_v22 = vld [vmem:[#allocation12 + $0x80] sm:$0xff] }
 0x2c5   :  { %808 = vmatpush.msra.mxu0 %v775_v32  ;;  %v1941_v32 = vld [vmem:[#allocation34_spill] sm:$0xff] }
 0x2c6   :  { %825 = vmatpush.msra.mxu1 %v794_v58 }
 0x2c7   :  { %v512_v33 = vpop.permute.xlu2 %511  ;;  %809 = vmatpush.msra.mxu0 %v774_v3  ;;  %v889_v3 = vld [vmem:[#allocation15 + $0x178] sm:$0xff] }
 0x2c8   :  { %v500_v31 = vpop.permute.xlu1 %499  ;;  %v655_v18 = vmul.f32 %v512_v33, %v1628_v40  ;;  %826 = vmatpush.msra.mxu1 %v793_v6  ;;  %v791_v33 = vld [vmem:[#allocation12 + $0xc8] sm:$0xff] }
 0x2c9   :  { %v653_v8 = vmul.f32 %v500_v31, %v1606_v29  ;;  %v703_v31 = vadd.f32 %v702_v11, %v667_v36  ;;  %v1938_v36 = vld [vmem:[#allocation29_spill] sm:$0xff] }
 0x2ca   :  { %827 = vmatpush.msra.mxu1 %v792_v55 }
 0x2cb   :  { %v684_v44 = vadd.f32 %v683_v13, %v653_v8  ;;  %v704_v54 = vadd.f32 %v703_v31, %v668_v46  ;;  %v1934_v8 = vld [vmem:[#allocation32_spill] sm:$0xff]  ;;  %v1940_v46 = vld [vmem:[#allocation31_spill] sm:$0xff] }
 0x2cc   :  { %828 = vmatpush.msra.mxu1 %v791_v33 }
 0x2cd   :  { %v685_v29 = vadd.f32 %v684_v44, %v654_v28  ;;  %v705_v62 = vadd.f32 %v704_v54, %v669_v61  ;;  %v786_v44 = vld [vmem:[#allocation12 + $0xa0] sm:$0xff] }
 0x2ce   :  { %829 = vmatpush.msra.mxu1 %v790_v0  ;;  %v882_v0 = vld [vmem:[#allocation15 + $0x140] sm:$0xff] }
 0x2cf   :  { %v1853_v47 = vpop.permute.xlu2 %614  ;;  %v686_v27 = vadd.f32 %v685_v29, %v655_v18  ;;  %v784_v29 = vld [vmem:[#allocation12 + $0x90] sm:$0xff]  ;;  %v783_v18 = vld [vmem:[#allocation12 + $0x88] sm:$0xff] }
 0x2d0   :  { %830 = vmatpush.msra.mxu1 %v789_v51 }
 0x2d1   :  { %v687_v23 = vadd.f32 %v686_v27, %v656_v25 }
 0x2d2   :  { %v1844_v60 = vpop.permute.xlu1 %602 }
 0x2d3   :  { %v670_v37 = vmul.f32 %v1844_v60, %v1618_v35  ;;  %v771_v35 = vld [vmem:[#allocation12 + $0x28] sm:$0xff]  ;;  %v788_v60 = vld [vmem:[#allocation12 + $0xb0] sm:$0xff] }
 0x2d4   :  { %831 = vmatpush.msra.mxu1 %v788_v60  ;;  %v1000_v60 = vld [vmem:[#allocation17 + $0x150] sm:$0xff] }
 0x2d5   :  { %v706_v34 = vadd.f32 %v705_v62, %v670_v37  ;;  %v885_v37 = vld [vmem:[#allocation15 + $0x158] sm:$0xff] }
 0x2d9   :  { %v1861_v19 = vpop.permute.xlu2 %620 }
 0x2da   :  { %v673_v4 = vmul.f32 %v1861_v19, %v1937_v57  ;;  %v867_v57 = vld [vmem:[#allocation15 + $0xc8] sm:$0xff] }
 0x2e2   :  { %v1848_v20 = vpop.permute.xlu1 %608 }
 0x2e3   :  { %v671_v15 = vmul.f32 %v1848_v20, %v1632_v42  ;;  %v770_v42 = vld [vmem:[#allocation12 + $0x20] sm:$0xff]  ;;  %v787_v20 = vld [vmem:[#allocation12 + $0xa8] sm:$0xff] }
 0x2e4   :  { %832 = vmatpush.msra.mxu1 %v787_v20  ;;  %v994_v20 = vld [vmem:[#allocation17 + $0x120] sm:$0xff] }
 0x2e5   :  { %v707_v9 = vadd.f32 %v706_v34, %v671_v15  ;;  %v883_v15 = vld [vmem:[#allocation15 + $0x148] sm:$0xff] }
 0x2e6   :  { %833 = vmatpush.msra.mxu1 %v786_v44  ;;  %v874_v44 = vld [vmem:[#allocation15 + $0x100] sm:$0xff] }
 0x2e8   :  { %834 = vmatpush.msra.mxu1 %v785_v5 }
 0x2e9   :  { %v536_v40 = vpop.permute.xlu2 %535 }
 0x2ea   :  { %v659_v10 = vmul.f32 %v536_v40, %v1654_v53  ;;  %v1935_v53 = vld [vmem:[#allocation27_spill] sm:$0xff]  ;;  %835 = vmatpush.msra.mxu1 %v784_v29  ;;  %v884_v40 = vld [vmem:[#allocation15 + $0x150] sm:$0xff] }
 0x2eb   :  { %v672_v38 = vmul.f32 %v1853_v47, %v1935_v53  ;;  %v766_v47 = vld [vmem:[#allocation12] sm:$0xff]  ;;  %v860_v29 = vld [vmem:[#allocation15 + $0x90] sm:$0xff] }
 0x2ec   :  { %836 = vmatpush.msra.mxu1 %v783_v18  ;;  %v866_v53 = vld [vmem:[#allocation15 + $0xc0] sm:$0xff] }
 0x2ed   :  { %v708_v28 = vadd.f32 %v707_v9, %v672_v38  ;;  %v869_v9 = vld [vmem:[#allocation15 + $0xd8] sm:$0xff] }
 0x2ee   :  { %837 = vmatpush.msra.mxu1 %v782_v22  ;;  %v873_v38 = vld [vmem:[#allocation15 + $0xf8] sm:$0xff] }
 0x2ef   :  { %v709_v21 = vadd.f32 %v708_v28, %v673_v4  ;;  %v445_v28 = vld [vmem:[#allocation4] sm:$0x3] }
 0x2f2   :  { %v524_v12 = vpop.permute.xlu1 %523 }
 0x2f3   :  { %v657_v63 = vmul.f32 %v524_v12, %v1644_v48  ;;  %v627_v48 = vpop.permute.xlu0 %626  ;;  %v768_v12 = vld [vmem:[#allocation12 + $0x10] sm:$0xff] }
 0x2f4   :  { %v674_v27 = vmul.f32 %v627_v48, %v1938_v36  ;;  %v888_v48 = vld [vmem:[#allocation15 + $0x170] sm:$0xff] }
 0x2f5   :  { %v688_v41 = vadd.f32 %v687_v23, %v657_v63  ;;  %v887_v63 = vld [vmem:[#allocation15 + $0x168] sm:$0xff]  ;;  %918 = vmatpush.msra.mxu3 %v888_v48  ;;  %v845_v48 = vld [vmem:[#allocation15 + $0x18] sm:$0xff] }
 0x2f6   :  { %v710_v25 = vadd.f32 %v709_v21, %v674_v27  ;;  %898 = vmatpush.msra.mxu2 %v887_v63  ;;  %v868_v21 = vld [vmem:[#allocation15 + $0xd0] sm:$0xff]  ;;  %v857_v27 = vld [vmem:[#allocation15 + $0x78] sm:$0xff]  ;;  %v854_v63 = vld [vmem:[#allocation15 + $0x60] sm:$0xff] }
 0x2f7   :  { %919 = vmatpush.msra.mxu3 %v885_v37 }
 0x2f8   :  { %899 = vmatpush.msra.mxu2 %v884_v40  ;;  %v861_v40 = vld [vmem:[#allocation15 + $0x98] sm:$0xff] }
 0x2f9   :  { %v542_v1 = vpop.permute.xlu2 %541  ;;  %920 = vmatpush.msra.mxu3 %v882_v0 }
 0x2fa   :  { %v660_v17 = vmul.f32 %v542_v1, %v1934_v8  ;;  %v872_v1 = vld [vmem:[#allocation15 + $0xf0] sm:$0xff] }
 0x2fb   :  { %v548_v13 = vpop.permute.xlu0 %547  ;;  %v876_v8 = vld [vmem:[#allocation15 + $0x110] sm:$0xff] }
 0x2fc   :  { %v661_v24 = vmul.f32 %v548_v13, %v1936_v49  ;;  %v863_v49 = vld [vmem:[#allocation15 + $0xa8] sm:$0xff] }
 0x302   :  { %v530_v56 = vpop.permute.xlu1 %529 }
 0x303   :  { %v658_v45 = vmul.f32 %v530_v56, %v1652_v52  ;;  %v773_v52 = vld [vmem:[#allocation12 + $0x38] sm:$0xff] }
 0x304   :  { %810 = vmatpush.msra.mxu0 %v773_v52  ;;  %v875_v52 = vld [vmem:[#allocation15 + $0x108] sm:$0xff] }
 0x305   :  { %v689_v30 = vadd.f32 %v688_v41, %v658_v45  ;;  %v881_v45 = vld [vmem:[#allocation15 + $0x138] sm:$0xff]  ;;  %v878_v41 = vld [vmem:[#allocation15 + $0x120] sm:$0xff] }
 0x306   :  { %811 = vmatpush.msra.mxu0 %v772_v2  ;;  %900 = vmatpush.msra.mxu2 %v881_v45  ;;  %v879_v2 = vld [vmem:[#allocation15 + $0x128] sm:$0xff] }
 0x307   :  { %v690_v16 = vadd.f32 %v689_v30, %v659_v10  ;;  %v886_v30 = vld [vmem:[#allocation15 + $0x160] sm:$0xff]  ;;  %v1003_v10 = vld [vmem:[#allocation17 + $0x168] sm:$0xff]  ;;  %921 = vmatpush.msra.mxu3 %v879_v2 }
 0x308   :  { %812 = vmatpush.msra.mxu0 %v771_v35  ;;  %901 = vmatpush.msra.mxu2 %v878_v41  ;;  %v880_v35 = vld [vmem:[#allocation15 + $0x130] sm:$0xff]  ;;  %v859_v45 = vld [vmem:[#allocation15 + $0x88] sm:$0xff]  ;;  %v998_v2 = vld [vmem:[#allocation17 + $0x140] sm:$0xff] }
 0x309   :  { %v691_v50 = vadd.f32 %v690_v16, %v660_v17  ;;  %v645_v19 = vpop.permute.xlu2 %644  ;;  %1014 = vmatpush.msrb.mxu1 %v1003_v10  ;;  %v997_v17 = vld [vmem:[#allocation17 + $0x138] sm:$0xff]  ;;  %922 = vmatpush.msra.mxu3 %v876_v8  ;;  %v856_v41 = vld [vmem:[#allocation15 + $0x70] sm:$0xff]  ;;  %v850_v8 = vld [vmem:[#allocation15 + $0x40] sm:$0xff] }
 0x30a   :  { %813 = vmatpush.msra.mxu0 %v770_v42  ;;  %v677_v55 = vmul.f32 %v645_v19, %v1941_v32  ;;  %902 = vmatpush.msra.mxu2 %v875_v52  ;;  %v877_v42 = vld [vmem:[#allocation15 + $0x118] sm:$0xff]  ;;  %v976_v32 = vld [vmem:[#allocation17 + $0x90] sm:$0xff] }
 0x30b   :  { %v692_v11 = vadd.f32 %v691_v50, %v661_v24  ;;  %1015 = vmatpush.msrb.mxu1 %v1000_v60  ;;  %v870_v24 = vld [vmem:[#allocation15 + $0xe0] sm:$0xff]  ;;  %923 = vmatpush.msra.mxu3 %v873_v38  ;;  %v849_v52 = vld [vmem:[#allocation15 + $0x38] sm:$0xff]  ;;  %v983_v60 = vld [vmem:[#allocation17 + $0xc8] sm:$0xff] }
 0x30c   :  { %814 = vmatpush.msra.mxu0 %v769_v39  ;;  %903 = vmatpush.msra.mxu2 %v872_v1  ;;  %v1001_v1 = vld [vmem:[#allocation17 + $0x158] sm:$0xff]  ;;  %v974_v38 = vld [vmem:[#allocation17 + $0x80] sm:$0xff] }
 0x30d   :  { %v693_v56 = vrot.slane %v692_v11, 4  ;;  %1016 = vmatpush.msrb.mxu1 %v997_v17  ;;  %924 = vmatpush.msra.mxu3 %v870_v24  ;;  %v973_v17 = vld [vmem:[#allocation17 + $0x78] sm:$0xff]  ;;  %v964_v24 = vld [vmem:[#allocation17 + $0x30] sm:$0xff] }
 0x30e   :  { %815 = vmatpush.msra.mxu0 %v768_v12  ;;  %904 = vmatpush.msra.mxu2 %v869_v9  ;;  %v991_v12 = vld [vmem:[#allocation17 + $0x108] sm:$0xff]  ;;  %v980_v9 = vld [vmem:[#allocation17 + $0xb0] sm:$0xff] }
 0x30f   :  { %v694_v14 = vadd.f32 %v693_v56, %v692_v11  ;;  %1017 = vmatpush.msrb.mxu1 %v994_v20  ;;  %v864_v56 = vld [vmem:[#allocation15 + $0xb0] sm:$0xff]  ;;  %925 = vmatpush.msra.mxu3 %v867_v57  ;;  %v847_v20 = vld [vmem:[#allocation15 + $0x28] sm:$0xff]  ;;  %v958_v57 = vld [vmem:[#allocation17] sm:$0xff] }
 0x310   :  { %816 = vmatpush.msra.mxu0 %v767_v43  ;;  %905 = vmatpush.msra.mxu2 %v866_v53  ;;  %v988_v43 = vld [vmem:[#allocation17 + $0xf0] sm:$0xff]  ;;  %v970_v53 = vld [vmem:[#allocation17 + $0x60] sm:$0xff] }
 0x311   :  { %v695_v61 = vrot.slane %v694_v14, 2  ;;  %1018 = vmatpush.msrb.mxu1 %v991_v12  ;;  %926 = vmatpush.msra.mxu3 %v864_v56  ;;  %v971_v12 = vld [vmem:[#allocation17 + $0x68] sm:$0xff]  ;;  %v978_v56 = vld [vmem:[#allocation17 + $0xa0] sm:$0xff] }
 0x312   :  { %v633_v7 = vpop.permute.xlu1 %632  ;;  %817 = vmatpush.msra.mxu0 %v766_v47  ;;  %v746_v47 = vld [vmem:[#allocation5] sm:$0x3]  ;;  %906 = vmatpush.msra.mxu2 %v863_v49  ;;  %v759_v37 = vpop.permute.xlu2 %758 }
 0x313   :  { %v675_v58 = vmul.f32 %v633_v7, %v1939_v59  ;;  %818 = vmatmul.f32.vlgmr.msra.gmra.mxu0 %v765_v26  ;;  %v696_v34 = vadd.f32 %v695_v61, %v694_v14  ;;  %v871_v7 = vld [vmem:[#allocation15 + $0xe8] sm:$0xff]  ;;  %v985_v26 = vld [vmem:[#allocation17 + $0xd8] sm:$0xff]  ;;  %1019 = vmatpush.msrb.mxu1 %v988_v43  ;;  %v862_v14 = vld [vmem:[#allocation15 + $0xa0] sm:$0xff] }
 0x314   :  { %938 = vmatpush.msrb.mxu0 %v889_v3  ;;  %907 = vmatpush.msra.mxu2 %v860_v29  ;;  %v852_v3 = vld [vmem:[#allocation15 + $0x50] sm:$0xff]  ;;  %v1005_v49 = vld [vmem:[#allocation17 + $0x178] sm:$0xff]  ;;  %v999_v29 = vld [vmem:[#allocation17 + $0x148] sm:$0xff] }
 0x315   :  { %v711_v6 = vadd.f32 %v710_v25, %v675_v58  ;;  %v697_v39 = vrot.slane %v696_v34, 1  ;;  %v865_v58 = vld [vmem:[#allocation15 + $0xb8] sm:$0xff]  ;;  %v982_v25 = vld [vmem:[#allocation17 + $0xc0] sm:$0xff]  ;;  %1020 = vmatpush.msrb.mxu1 %v985_v26  ;;  %927 = vmatpush.msra.mxu3 %v861_v40 }
 0x316   :  { %939 = vmatpush.msrb.mxu0 %v886_v30  ;;  %908 = vmatpush.msra.mxu2 %v857_v27  ;;  %v842_v30 = vld [vmem:[#allocation15] sm:$0xff]  ;;  %v965_v43 = vld [vmem:[#allocation17 + $0x38] sm:$0xff] }
 0x317   :  { %v698_v4 = vadd.f32 %v697_v39, %v696_v34  ;;  %1021 = vmatpush.msrb.mxu1 %v982_v25  ;;  %v992_v34 = vld [vmem:[#allocation17 + $0x110] sm:$0xff]  ;;  %v990_v26 = vld [vmem:[#allocation17 + $0x100] sm:$0xff]  ;;  %v981_v27 = vld [vmem:[#allocation17 + $0xb8] sm:$0xff] }
 0x318   :  { %940 = vmatpush.msrb.mxu0 %v883_v15  ;;  %909 = vmatpush.msra.mxu2 %v854_v63  ;;  %v844_v39 = vld [vmem:[#allocation15 + $0x10] sm:$0xff]  ;;  %v1212_v25 = vld [vmem:[#allocation14] ss:$0 sm:$0xff]  ;;  %v966_v63 = vld [vmem:[#allocation17 + $0x40] sm:$0xff] }
 0x31a   :  { %941 = vmatpush.msrb.mxu0 %v880_v35  ;;  %v986_v35 = vld [vmem:[#allocation17 + $0xe0] sm:$0xff] }
 0x31c   :  { %942 = vmatpush.msrb.mxu0 %v877_v42  ;;  %v846_v42 = vld [vmem:[#allocation15 + $0x20] sm:$0xff] }
 0x31e   :  { %943 = vmatpush.msrb.mxu0 %v874_v44  ;;  %v967_v44 = vld [vmem:[#allocation17 + $0x48] sm:$0xff] }
 0x320   :  { %944 = vmatpush.msrb.mxu0 %v871_v7  ;;  %v961_v7 = vld [vmem:[#allocation17 + $0x18] sm:$0xff] }
 0x322   :  { %v639_v31 = vpop.permute.xlu1 %638  ;;  %945 = vmatpush.msrb.mxu0 %v868_v21  ;;  %v1887_v21 = vld [vmem:[#allocation9] sm:$0x3] }
 0x323   :  { %v676_v23 = vmul.f32 %v639_v31, %v1940_v46  ;;  %v851_v46 = vld [vmem:[#allocation15 + $0x48] sm:$0xff] }
 0x324   :  { %946 = vmatpush.msrb.mxu0 %v865_v58  ;;  %910 = vmatpush.msra.mxu2 %v851_v46  ;;  %v972_v58 = vld [vmem:[#allocation17 + $0x70] sm:$0xff] }
 0x325   :  { %v712_v54 = vadd.f32 %v711_v6, %v676_v23  ;;  %v979_v6 = vld [vmem:[#allocation17 + $0xa8] sm:$0xff]  ;;  %v858_v23 = vld [vmem:[#allocation15 + $0x80] sm:$0xff] }
 0x326   :  { %947 = vmatpush.msrb.mxu0 %v862_v14  ;;  %1022 = vmatpush.msrb.mxu1 %v979_v6  ;;  %v963_v14 = vld [vmem:[#allocation17 + $0x28] sm:$0xff]  ;;  %v960_v6 = vld [vmem:[#allocation17 + $0x10] sm:$0xff] }
 0x327   :  { %v713_v33 = vadd.f32 %v712_v54, %v677_v55  ;;  %v848_v55 = vld [vmem:[#allocation15 + $0x30] sm:$0xff]  ;;  %v855_v54 = vld [vmem:[#allocation15 + $0x68] sm:$0xff]  ;;  %928 = vmatpush.msra.mxu3 %v858_v23 }
 0x328   :  { %948 = vmatpush.msrb.mxu0 %v859_v45  ;;  %1023 = vmatpush.msrb.mxu1 %v976_v32  ;;  %v1006_v45 = vld [vmem:[%s1913_s8] sm:$0x7] }
 0x329   :  { %v714_v62 = vrot.slane %v713_v33, 4  ;;  %911 = vmatpush.msra.mxu2 %v848_v55  ;;  %929 = vmatpush.msra.mxu3 %v855_v54  ;;  %v1008_v32 = vperm.slane %v1006_v45, 0  ;;  %v890_v55 = vld [vmem:[%s1911_s6] sm:$0x7]  ;;  %s1475_s6 = smov [#allocation18]  }
 0x32a   :  { %949 = vmatpush.msrb.mxu0 %v856_v41  ;;  %1024 = vmatpush.msrb.mxu1 %v973_v17  ;;  %v892_v41 = vperm.slane %v890_v55, 0  ;;  %s1127_s8 = sshll.u32 %s1475_s6, 4  ;;  %s1128_s8 = int_to_ptr.vmem [resolvable:$true] %s1127_s8 }
 0x32b   :  { %v715_v51 = vadd.f32 %v714_v62, %v713_v33  ;;  %v449_v16 = vpop.permute.xlu1 %448  ;;  %v853_v33 = vld [vmem:[#allocation15 + $0x58] sm:$0xff]  ;;  %912 = vmatpush.msra.mxu2 %v845_v48  ;;  %v1004_v62 = vld [vmem:[#allocation17 + $0x170] sm:$0xff]  ;;  %930 = vmatpush.msra.mxu3 %v852_v3 }
 0x32c   :  { %v451_v22 = vmul.f32 %v449_v16, %v445_v28  ;;  %950 = vmatpush.msrb.mxu0 %v853_v33  ;;  %v989_v16 = vld [vmem:[#allocation17 + $0xf8] sm:$0xff]  ;;  %1025 = vmatpush.msrb.mxu1 %v970_v53  ;;  %v968_v28 = vld [vmem:[#allocation17 + $0x50] sm:$0xff] }
 0x32d   :  { %v716_v13 = vrot.slane %v715_v51, 2  ;;  %913 = vmatpush.msra.mxu2 %v842_v30  ;;  %931 = vmatpush.msra.mxu3 %v849_v52  ;;  %v1009_v52 = vperm.slane %v1006_v45, 1 }
 0x32e   :  { %951 = vmatpush.msrb.mxu0 %v850_v8  ;;  %1026 = vmatpush.msrb.mxu1 %v967_v44  ;;  %v1010_v8 = vperm.slane %v1006_v45, 2 }
 0x32f   :  { %v717_v50 = vadd.f32 %v716_v13, %v715_v51  ;;  %1034 = vmatpush.msrb.mxu2 %v1004_v62  ;;  %v995_v51 = vld [vmem:[#allocation17 + $0x128] sm:$0xff]  ;;  %v977_v13 = vld [vmem:[#allocation17 + $0x98] sm:$0xff]  ;;  %932 = vmatpush.msra.mxu3 %v846_v42 }
 0x330   :  { %952 = vmatpush.msrb.mxu0 %v847_v20  ;;  %1027 = vmatpush.msrb.mxu1 %v964_v24 }
 0x331   :  { %v718_v5 = vrot.slane %v717_v50, 1  ;;  %1035 = vmatpush.msrb.mxu2 %v1001_v1 }
 0x332   :  { %953 = vmatpush.msrb.mxu0 %v844_v39  ;;  %1028 = vmatpush.msrb.mxu1 %v961_v7 }
 0x333   :  { %v719_v11 = vadd.f32 %v718_v5, %v717_v50  ;;  %v751_v18 = vpop.permute.xlu1 %750  ;;  %1036 = vmatpush.msrb.mxu2 %v998_v2  ;;  %v843_v50 = vld [vmem:[#allocation15 + $0x8] sm:$0xff]  ;;  %v1002_v5 = vld [vmem:[#allocation17 + $0x160] sm:$0xff] }
 0x334   :  { %v753_v36 = vsub.f32 %v746_v47, %v751_v18  ;;  %933 = vmatpush.msra.mxu3 %v843_v50  ;;  %v959_v47 = vld [vmem:[#allocation17 + $0x8] sm:$0xff]  ;;  %1029 = vmatpush.msrb.mxu1 %v958_v57  ;;  %v993_v18 = vld [vmem:[#allocation17 + $0x118] sm:$0xff] }
 0x335   :  { %v722_v59 = vsel %vm412_vm1, %v719_v11, %v698_v4  ;;  %1037 = vmatpush.msrb.mxu2 %v995_v51  ;;  %v962_v4 = vld [vmem:[#allocation17 + $0x20] sm:$0xff]  ;;  %v996_v11 = vld [vmem:[#allocation17 + $0x130] sm:$0xff] }
 0x336   :  { %v724_v19 = vadd.f32 %v722_v59, %v451_v22  ;;  %v754_v31 = vmul.f32 1.442695, %v753_v36  ;;  %1054 = vmatpush.msrb.mxu3 %v1005_v49  ;;  %v987_v22 = vld [vmem:[#allocation17 + $0xe8] sm:$0xff]  ;;  %v984_v36 = vld [vmem:[#allocation17 + $0xd0] sm:$0xff] }
 0x337   :  { %1038 = vmatpush.msrb.mxu2 %v992_v34  ;;  %v975_v59 = vld [vmem:[#allocation17 + $0x88] sm:$0xff] }
 0x338   :  { %725 = vst [vmem:[#allocation4] sm:$0x3] %v724_v19  ;;  %1219 = vpow2.f32 %v754_v31  ;;  %1055 = vmatpush.msrb.mxu3 %v1002_v5  ;;  %v969_v19 = vld [vmem:[#allocation17 + $0x58] sm:$0xff] }
 0x339   :  { %1039 = vmatpush.msrb.mxu2 %v989_v16 }
 0x33a   :  { %1056 = vmatpush.msrb.mxu3 %v999_v29 }
 0x33b   :  { %1040 = vmatpush.msrb.mxu2 %v986_v35 }
 0x33c   :  { %1057 = vmatpush.msrb.mxu3 %v996_v11 }
 0x33d   :  { %1041 = vmatpush.msrb.mxu2 %v983_v60 }
 0x33e   :  { %v1220_v61 = vpop.eup %1219  ;;  %1058 = vmatpush.msrb.mxu3 %v993_v18 }
 0x33f   :  { %v763_v0 = vld [vmem:[#allocation4] sm:$0x3]  ;;  %v761_v15 = vmul.f32 %v1220_v61, %v759_v37  ;;  %1042 = vmatpush.msrb.mxu2 %v980_v9 }
 0x340   :  { %v764_v10 = vmul.f32 %v763_v0, %v759_v37  ;;  %1059 = vmatpush.msrb.mxu3 %v990_v26  ;;  %v893_v37 = vperm.slane %v890_v55, 1 }
 0x341   :  { %762 = vst [vmem:[#allocation19] sm:$0x3] %v761_v15  ;;  %1043 = vmatpush.msrb.mxu2 %v977_v13 }
 0x342   :  { %838 = vmatmul.f32.vlgmr.msra.gmra.mxu1 %v764_v10  ;;  %1060 = vmatpush.msrb.mxu3 %v987_v22  ;;  %1143 = dma.vmem_to_hbm [thread:$0]  %s1139_s7, 32, %s1141_s28, [#allocation20]  }
 0x343   :  { %1044 = vmatpush.msrb.mxu2 %v974_v38  ;;  %v894_v38 = vperm.slane %v890_v55, 2 }
 0x344   :  { %1061 = vmatpush.msrb.mxu3 %v984_v36 }
 0x345   :  { %1045 = vmatpush.msrb.mxu2 %v971_v12 }
 0x346   :  { %1062 = vmatpush.msrb.mxu3 %v981_v27 }
 0x347   :  { %1046 = vmatpush.msrb.mxu2 %v968_v28 }
 0x348   :  { %1063 = vmatpush.msrb.mxu3 %v978_v56 }
 0x349   :  { %1047 = vmatpush.msrb.mxu2 %v965_v43 }
 0x34a   :  { %1030 = vmatmul.f32.vlgmr.msrb.gmra.mxu1 %v1887_v21  ;;  %1064 = vmatpush.msrb.mxu3 %v975_v59 }
 0x34b   :  { %1048 = vmatpush.msrb.mxu2 %v962_v4 }
 0x34c   :  { %1065 = vmatpush.msrb.mxu3 %v972_v58 }
 0x34d   :  { %1049 = vmatpush.msrb.mxu2 %v959_v47 }
 0x34e   :  { %1066 = vmatpush.msrb.mxu3 %v969_v19 }
 0x350   :  { %1067 = vmatpush.msrb.mxu3 %v966_v63 }
 0x352   :  { %1068 = vmatpush.msrb.mxu3 %v963_v14 }
 0x354   :  { %1069 = vmatpush.msrb.mxu3 %v960_v6 }
 0x390   :  { %v819_v31 = vpop.f32.mrf.mxu0 }
 0x391   :  { %v820_v40 = vadd.f32 %v1212_v25, %v819_v31 }
 0x3bf   :  { %v839_v46 = vpop.f32.mrf.mxu1 }
 0x3c0   :  { %v840_v23 = vadd.f32 %v839_v46, %v820_v40 }
 0x3c2   :  { %914 = vmatmul.f32.vlgmr.msra.gmra.mxu2 %v840_v23  ;;  %934 = vmatmul.f32.vlgmr.msra.gmra.mxu3 %v840_v23 }
 0x3c3   :  { %954 = vmatmul.f32.vlgmr.msrb.gmra.mxu0 %v840_v23 }
 0x3c7   :  { %v1031_v54 = vpop.f32.mrf.mxu1 }
 0x3c8   :  { %v1032_v48 = vadd.f32 %v1031_v54, %v1008_v32 }
 0x3ca   :  { %1050 = vmatmul.f32.vlgmr.msrb.gmra.mxu2 %v1887_v21  ;;  %1070 = vmatmul.f32.vlgmr.msrb.gmra.mxu3 %v1887_v21 }
 0x440   :  { %v955_v12 = vpop.f32.mrf.mxu0 }
 0x441   :  { %v956_v7 = vadd.f32 %v955_v12, %v894_v38 }
 0x445   :  { %v915_v3 = vpop.f32.mrf.mxu2  ;;  %v935_v0 = vpop.f32.mrf.mxu3 }
 0x446   :  { %v916_v33 = vadd.f32 %v915_v3, %v892_v41  ;;  %v936_v15 = vadd.f32 %v935_v0, %v893_v37 }
 0x448   :  { %v1074_v61 = vadd.f32 %v1032_v48, %v916_v33 }
 0x44a   :  { %v1159_v30 = vmul.f32 -1.442695, %v1074_v61 }
 0x44c   :  { %1221 = vpow2.f32 %v1159_v30 }
 0x44d   :  { %v1051_v62 = vpop.f32.mrf.mxu2  ;;  %v1071_v13 = vpop.f32.mrf.mxu3 }
 0x44e   :  { %v1052_v10 = vadd.f32 %v1051_v62, %v1009_v52  ;;  %v1072_v50 = vadd.f32 %v1071_v13, %v1010_v8 }
 0x450   :  { %v1094_v1 = vadd.f32 %v1052_v10, %v936_v15 }
 0x452   :  { %v1222_v2 = vpop.eup %1221  ;;  %v1160_v51 = vmul.f32 -1.442695, %v1094_v1 }
 0x453   :  { %v1078_v34 = vadd.f32 1.0, %v1222_v2 }
 0x454   :  { %1223 = vpow2.f32 %v1160_v51 }
 0x455   :  { %1225 = vrcp.f32 %v1078_v34  ;;  %v1090_v42 = vand.u32 2147483648, %v1078_v34  ;;  %v1088_v53 = vand.u32 2147483647, %v1078_v34  ;;  %vm1084_vm8 = vweird.f32 %v1078_v34 }
 0x457   :  { %v1091_v49 = vor.u32 1.1754944e-38, %v1090_v42  ;;  %vm1089_vm10 = vcmp.eq.f32.partialorder %v1088_v53, 8.507059e+37 }
 0x45a   :  { %v1224_v16 = vpop.eup %1223 }
 0x45b   :  { %v1226_v35 = vpop.eup %1225  ;;  %v1098_v60 = vadd.f32 1.0, %v1224_v16 }
 0x45c   :  { %v1080_v9 = vmul.f32 %v1226_v35, %v1078_v34  ;;  %vm1085_vm7 = vweird.f32 %v1226_v35 }
 0x45d   :  { %1227 = vrcp.f32 %v1098_v60  ;;  %vm1086_vm9 = vmor %vm1084_vm8, %vm1085_vm7  ;;  %v1110_v57 = vand.u32 2147483648, %v1098_v60  ;;  %v1108_v47 = vand.u32 2147483647, %v1098_v60  ;;  %vm1104_vm12 = vweird.f32 %v1098_v60 }
 0x45e   :  { %v1081_v17 = vsub.f32 1.0, %v1080_v9 }
 0x45f   :  { %v1111_v26 = vor.u32 1.1754944e-38, %v1110_v57  ;;  %vm1109_vm14 = vcmp.eq.f32.partialorder %v1108_v47, 8.507059e+37 }
 0x460   :  { %v1082_v20 = vmul.f32 %v1226_v35, %v1081_v17 }
 0x462   :  { %v1083_v39 = vadd.f32 %v1226_v35, %v1082_v20 }
 0x463   :  { %v1228_v44 = vpop.eup %1227 }
 0x464   :  { %v1100_v24 = vmul.f32 %v1228_v44, %v1098_v60  ;;  %v1087_v28 = vsel %vm1086_vm9, %v1226_v35, %v1083_v39  ;;  %vm1105_vm11 = vweird.f32 %v1228_v44 }
 0x465   :  { %v1092_v5 = vsel %vm1089_vm10, %v1091_v49, %v1087_v28  ;;  %vm1106_vm13 = vmor %vm1104_vm12, %vm1105_vm11 }
 0x466   :  { %v1101_v43 = vsub.f32 1.0, %v1100_v24  ;;  %v1114_v29 = vmul.f32 %v1092_v5, %v1072_v50 }
 0x468   :  { %v1115_v4 = vadd.f32 %v1114_v29, %v956_v7  ;;  %v1102_v11 = vmul.f32 %v1228_v44, %v1101_v43 }
 0x46a   :  { %1229 = vtanh.f32 %v1115_v4  ;;  %v1103_v18 = vadd.f32 %v1228_v44, %v1102_v11 }
 0x46c   :  { %v1107_v22 = vsel %vm1106_vm13, %v1228_v44, %v1103_v18 }
 0x46d   :  { %v1112_v36 = vsel %vm1109_vm14, %v1111_v26, %v1107_v22 }
 0x46e   :  { %v1117_v27 = vsub.f32 1.0, %v1112_v36  ;;  %v1119_v58 = vmul.f32 %v1887_v21, %v1112_v36 }
 0x470   :  { %v1230_v56 = vpop.eup %1229 }
 0x471   :  { %v1118_v59 = vmul.f32 %v1230_v56, %v1117_v27 }
 0x473   :  { %v1120_v25 = vadd.f32 %v1119_v58, %v1118_v59 }
 0x475   :  { %1121 = vst [vmem:[#allocation18] sm:$0x3] %v1120_v25 }
 0x476   :  { %1132 = dma.vmem_to_hbm [thread:$0]  %s1128_s8, 32, %s1130_s13, [#allocation8]  }
 0x477   :  { %1456 = dma.done.wait [#allocation8], 32  }
 0x478   :  { %1457 = vsyncadd [#allocation8], 4294967264 }
 0x479   :  { %1458 = dma.done.wait [#allocation20], 32  }
 0x47a   :  { %1459 = vsyncadd [#allocation20], 4294967264 }
 0x47b   :  { %1152 = vsyncpa [#allocation7], 1 }
 0x47c   :  { %1153 = vsyncpa [#allocation10], 1 }
 0x47d   :  { %1154 = vsyncpa [#allocation13], 1 }
 0x47e   :  { %1155 = vsyncpa [#allocation16], 1 }
 0x47f   :  { %1156 = vsyncpa [#allocation8], 1 }
 0x480   :  { %1157 = vsyncpa [#allocation20], 1 }

</bundles_post_ra>
